<compile_context>
chip_gen: v7x
topology: tpu7x:2x2x1
jax: 0.10.0
libtpu: 0.0.40
codegen_flags: <defaults>
</compile_context>

<pallas_src>
import functools
import math

import jax
import jax.numpy as jnp
from jax.experimental import pallas as pl
from jax.experimental.pallas import tpu as pltpu


# ----------------------------- config -----------------------------------
CFG = dict(
    vocab_size=64,
    context_length=16,
    emb_dim=32,
    n_heads=4,
    n_layers=2,
    dropout=0.0,       # inference: identity
    qkv_bias=False,
)
EPS = 1e-5


# --------------------------- kernel helpers ------------------------------
def _layernorm(v, scale, shift):
    # matches the custom LayerNorm: unbiased=False variance, eps=1e-5
    mean = jnp.mean(v, axis=-1, keepdims=True)
    var = jnp.mean((v - mean) ** 2, axis=-1, keepdims=True)
    return (v - mean) / jnp.sqrt(var + EPS) * scale + shift


def _gelu_tanh(v):
    # GELU tanh approximation (as used in the reference GPT implementation)
    return 0.5 * v * (1.0 + jnp.tanh(jnp.sqrt(2.0 / jnp.pi) * (v + 0.044715 * v ** 3)))


# ------------------------ fused full-forward kernel ----------------------
def gpt_forward_kernel(
    x_ref,                       # (B*T, D)    residual stream (flattened)
    ln1_s_ref, ln1_b_ref,        # (L, 1, D)
    wqkv_ref,                    # (L, D, 3D)  fused Q|K|V, scale folded into Q
    wo_ref,                      # (L, H, Dh, D) per-head output-proj slabs
    bo_ref,                      # (L, 1, D)
    ln2_s_ref, ln2_b_ref,        # (L, 1, D)
    w1_ref, b1_ref,              # (L, D, 4D), (L, 1, 4D)
    w2_ref, b2_ref,              # (L, 4D, D), (L, 1, D)
    fs_ref, fb_ref,              # (1, D)      final LayerNorm
    wout_ref,                    # (D, Vpad)   LM head, vocab zero-padded to 128
    out_ref,                     # (B*T, Vpad) lane-dense logits
    *, n_layers, n_heads, B, T,
):
    BT, D = x_ref.shape
    Dh = D // n_heads
    f32 = jnp.float32

    x = x_ref[...]                                       # (B*T, D), f32

    # Causal additive mask: built ONCE, reused by every layer / head.
    rows = jax.lax.broadcasted_iota(jnp.int32, (T, T), 0)
    cols = jax.lax.broadcasted_iota(jnp.int32, (T, T), 1)
    neg_mask = jnp.where(cols <= rows, 0.0, -1e30).astype(f32)      # (T, T)
    neg_mask = jnp.broadcast_to(neg_mask[None, :, :], (B, T, T))    # hoisted broadcast

    for l in range(n_layers):                  # tiny, static unroll
        # ---------------- attention branch (pre-LN) ----------------
        xn = _layernorm(x, ln1_s_ref[l], ln1_b_ref[l])              # (BT, D)
        # One wide fused QKV projection (1/sqrt(Dh) already folded into Wq).
        qkv = jnp.dot(xn, wqkv_ref[l], preferred_element_type=f32)  # (BT, 3D)
        qkv3 = qkv.reshape(B, T, 3 * D)

        attn3 = None
        for h in range(n_heads):               # static unroll; 3-D leading-batch einsums
            q_h = qkv3[:, :, h * Dh:(h + 1) * Dh]                   # (B, T, Dh)
            k_h = qkv3[:, :, D + h * Dh:D + (h + 1) * Dh]
            v_h = qkv3[:, :, 2 * D + h * Dh:2 * D + (h + 1) * Dh]

            s = jnp.einsum("bqd,bkd->bqk", q_h, k_h,
                           preferred_element_type=f32) + neg_mask   # (B, T, T)
            m = jnp.max(s, axis=-1, keepdims=True)
            e = jnp.exp(s - m)
            p = e * pl.reciprocal(jnp.sum(e, axis=-1, keepdims=True), approx=True)
            ctx_h = jnp.einsum("bqk,bkd->bqd", p, v_h,
                               preferred_element_type=f32)          # (B, T, Dh)
            # Fold Wo into the head loop: accumulate per-head contribution,
            # no lane-axis concatenate needed.
            contrib = jnp.einsum("btd,de->bte", ctx_h, wo_ref[l, h],
                                 preferred_element_type=f32)        # (B, T, D)
            attn3 = contrib if attn3 is None else attn3 + contrib

        x = x + attn3.reshape(BT, D) + bo_ref[l]      # residual (dropout = identity)

        # ---------------- MLP branch (pre-LN) ----------------
        xn2 = _layernorm(x, ln2_s_ref[l], ln2_b_ref[l])
        h1 = jnp.dot(xn2, w1_ref[l], preferred_element_type=f32) + b1_ref[l]
        h1 = _gelu_tanh(h1)
        x = x + jnp.dot(h1, w2_ref[l], preferred_element_type=f32) + b2_ref[l]

    # ---------------- final LayerNorm + LM head ----------------
    xf = _layernorm(x, fs_ref[...], fb_ref[...])
    out_ref[...] = jnp.dot(xf, wout_ref[...],
                           preferred_element_type=f32).astype(out_ref.dtype)


def gpt_forward_pallas(x2d, fused, cfg, B, T):
    VP = fused["wout_p"].shape[-1]
    ins = (x2d,
           fused["ln1_s"], fused["ln1_b"], fused["wqkv"], fused["wo_h"], fused["bo"],
           fused["ln2_s"], fused["ln2_b"], fused["w1"], fused["b1"],
           fused["w2"], fused["b2"], fused["final_s"], fused["final_b"],
           fused["wout_p"])
    vmem = pl.BlockSpec(memory_space=pltpu.MemorySpace.VMEM)
    kern = functools.partial(gpt_forward_kernel,
                             n_layers=cfg["n_layers"], n_heads=cfg["n_heads"],
                             B=B, T=T)
    return pl.pallas_call(
        kern,
        out_shape=jax.ShapeDtypeStruct((B * T, VP), jnp.float32),
        in_specs=[vmem] * len(ins),
        out_specs=vmem,
    )(*ins)


# ----------------------------- parameters --------------------------------
def init_params(key, cfg):
    D = cfg["emb_dim"]
    V = cfg["vocab_size"]
    C = cfg["context_length"]
    Dff = 4 * D

    def nrm(k, shape, scale=0.02):
        return (scale * jax.random.normal(k, shape)).astype(jnp.float32)

    keys = jax.random.split(key, 4 + 8 * cfg["n_layers"])
    ki = iter(keys)

    params = dict(
        tok_emb=nrm(next(ki), (V, D)),
        pos_emb=nrm(next(ki), (C, D)),
        final_scale=jnp.ones((1, 1, D), jnp.float32),
        final_shift=jnp.zeros((1, 1, D), jnp.float32),
        out_w=nrm(next(ki), (D, V)),  # out_head.weight.T  (no bias)
        layers=[],
    )
    for _ in range(cfg["n_layers"]):
        lp = dict(
            ln1_s=jnp.ones((1, 1, D), jnp.float32),
            ln1_b=jnp.zeros((1, 1, D), jnp.float32),
            wq=nrm(next(ki), (D, D)),
            wk=nrm(next(ki), (D, D)),
            wv=nrm(next(ki), (D, D)),
            wo=nrm(next(ki), (D, D)),
            bo=jnp.zeros((1, 1, D), jnp.float32),
            ln2_s=jnp.ones((1, 1, D), jnp.float32),
            ln2_b=jnp.zeros((1, 1, D), jnp.float32),
            w1=nrm(next(ki), (D, Dff)),
            b1=jnp.zeros((1, 1, Dff), jnp.float32),
            w2=nrm(next(ki), (Dff, D)),
            b2=jnp.zeros((1, 1, D), jnp.float32),
        )
        params["layers"].append(lp)
    return params


def prepare_fused_params(params, cfg):
    """Stack per-layer weights, fuse QKV (scale folded into Wq), split Wo per
    head, flatten LN params/biases to 2-D rows, and zero-pad the LM head to a
    lane-dense (multiple-of-128) vocab width."""
    L, H, D = cfg["n_layers"], cfg["n_heads"], cfg["emb_dim"]
    Dh = D // H
    V = cfg["vocab_size"]
    VP = ((V + 127) // 128) * 128
    scale = 1.0 / math.sqrt(Dh)
    layers = params["layers"]

    def stack2d(key, width):
        return jnp.stack([lp[key].reshape(1, width) for lp in layers])  # (L, 1, width)

    wq = jnp.stack([lp["wq"] * scale for lp in layers])    # fold 1/sqrt(Dh)
    wk = jnp.stack([lp["wk"] for lp in layers])
    wv = jnp.stack([lp["wv"] for lp in layers])

    return dict(
        ln1_s=stack2d("ln1_s", D), ln1_b=stack2d("ln1_b", D),
        wqkv=jnp.concatenate([wq, wk, wv], axis=-1),                     # (L, D, 3D)
        wo_h=jnp.stack([lp["wo"] for lp in layers]).reshape(L, H, Dh, D),
        bo=stack2d("bo", D),
        ln2_s=stack2d("ln2_s", D), ln2_b=stack2d("ln2_b", D),
        w1=jnp.stack([lp["w1"] for lp in layers]),                       # (L, D, 4D)
        b1=stack2d("b1", 4 * D),
        w2=jnp.stack([lp["w2"] for lp in layers]),                       # (L, 4D, D)
        b2=stack2d("b2", D),
        final_s=params["final_scale"].reshape(1, D),
        final_b=params["final_shift"].reshape(1, D),
        wout_p=jnp.pad(params["out_w"], ((0, 0), (0, VP - V))),          # (D, VP)
    )


# ----------------------------- forward pass -------------------------------
def model_forward(in_idx, params, cfg):
    B, T = in_idx.shape
    D, V = cfg["emb_dim"], cfg["vocab_size"]
    fused = prepare_fused_params(params, cfg)

    tok = params["tok_emb"][in_idx]          # (B, T, D) -- glue gather
    pos = params["pos_emb"][:T]              # (T, D)
    x2d = (tok + pos[None, :, :]).astype(jnp.float32).reshape(B * T, D)
    # drop_emb: identity (inference)

    logits_p = gpt_forward_pallas(x2d, fused, cfg, B, T)   # (B*T, Vpad), lane-dense
    return logits_p.reshape(B, T, -1)[:, :, :V]


# ------------------------ pure-JAX reference (check) ----------------------
def _ref_forward(in_idx, params, cfg):
    B, T = in_idx.shape
    D = cfg["emb_dim"]
    H = cfg["n_heads"]
    Dh = D // H
    x = params["tok_emb"][in_idx] + params["pos_emb"][:T][None]
    causal = jnp.tril(jnp.ones((T, T), bool))
    for lp in params["layers"]:
        xn = _layernorm(x, lp["ln1_s"], lp["ln1_b"])
        q = xn @ lp["wq"]; k = xn @ lp["wk"]; v = xn @ lp["wv"]
        q = q.reshape(B, T, H, Dh); k = k.reshape(B, T, H, Dh); v = v.reshape(B, T, H, Dh)
        s = jnp.einsum("bqhd,bkhd->bhqk", q, k) / math.sqrt(Dh)
        s = jnp.where(causal[None, None], s, -1e30)
        p = jax.nn.softmax(s, axis=-1)
        ctx = jnp.einsum("bhqk,bkhd->bqhd", p, v).reshape(B, T, D)
        x = x + (ctx @ lp["wo"] + lp["bo"])
        xn2 = _layernorm(x, lp["ln2_s"], lp["ln2_b"])
        h = _gelu_tanh(xn2 @ lp["w1"] + lp["b1"])
        x = x + (h @ lp["w2"] + lp["b2"])
    x = _layernorm(x, params["final_scale"], params["final_shift"])
    return x @ params["out_w"]


# --------------------------------- main -----------------------------------
if __name__ == "__main__":
    key = jax.random.PRNGKey(0)
    kp, kx = jax.random.split(key)

    params = init_params(kp, CFG)

    B, T = 2, 8
    in_idx = jax.random.randint(kx, (B, T), 0, CFG["vocab_size"], dtype=jnp.int32)

    logits = model_forward(in_idx, params, CFG)
    logits = jax.block_until_ready(logits)

    ref = _ref_forward(in_idx, params, CFG)
    assert logits.shape == (B, T, CFG["vocab_size"])
    # Tolerance 1e-3: the kernel uses the EUP approximate reciprocal in softmax.
    assert jnp.allclose(logits, ref, atol=1e-3, rtol=1e-3), "mismatch vs reference"

    print("KERNEL_OK")
</pallas_src>

<mosaic_0001>
module attributes {stable_mosaic.version = 11 : i64} {
  func.func @gpt_forward_kernel(%arg0: memref<16x32xf32, #tpu.memory_space<vmem>>, %arg1: memref<2x1x32xf32, #tpu.memory_space<vmem>>, %arg2: memref<2x1x32xf32, #tpu.memory_space<vmem>>, %arg3: memref<2x32x96xf32, #tpu.memory_space<vmem>>, %arg4: memref<2x4x8x32xf32, #tpu.memory_space<vmem>>, %arg5: memref<2x1x32xf32, #tpu.memory_space<vmem>>, %arg6: memref<2x1x32xf32, #tpu.memory_space<vmem>>, %arg7: memref<2x1x32xf32, #tpu.memory_space<vmem>>, %arg8: memref<2x32x128xf32, #tpu.memory_space<vmem>>, %arg9: memref<2x1x128xf32, #tpu.memory_space<vmem>>, %arg10: memref<2x128x32xf32, #tpu.memory_space<vmem>>, %arg11: memref<2x1x32xf32, #tpu.memory_space<vmem>>, %arg12: memref<1x32xf32, #tpu.memory_space<vmem>>, %arg13: memref<1x32xf32, #tpu.memory_space<vmem>>, %arg14: memref<32x128xf32, #tpu.memory_space<vmem>>, %arg15: memref<16x128xf32, #tpu.memory_space<vmem>>) attributes {dimension_semantics = [], scalar_prefetch = 0 : i64, scratch_operands = 0 : i64, tpu.core_type = #tpu.core_type<tc>} {
    %c0 = arith.constant 0 : index
    %c0_0 = arith.constant 0 : index
    %0 = vector.load %arg0[%c0, %c0_0] : memref<16x32xf32, #tpu.memory_space<vmem>>, vector<16x32xf32>
    %1 = tpu.iota {dimensions = array<i32: 0>} : vector<8x8xi32>
    %2 = tpu.iota {dimensions = array<i32: 1>} : vector<8x8xi32>
    %3 = arith.cmpi sle, %2, %1 : vector<8x8xi32>
    %cst = arith.constant 0.000000e+00 : f32
    %cst_1 = arith.constant -1.000000e+30 : f32
    %4 = vector.broadcast %cst : f32 to vector<8x8xf32>
    %5 = vector.broadcast %cst_1 : f32 to vector<8x8xf32>
    %6 = arith.select %3, %4, %5 : vector<8x8xi1>, vector<8x8xf32>
    %7 = vector.shape_cast %6 : vector<8x8xf32> to vector<1x8x8xf32>
    %8 = vector.shape_cast %7 : vector<1x8x8xf32> to vector<1x8x8xf32>
    %9 = vector.broadcast %8 : vector<1x8x8xf32> to vector<2x8x8xf32>
    %c0_2 = arith.constant 0 : index
    %c0_3 = arith.constant 0 : index
    %c0_4 = arith.constant 0 : index
    %10 = vector.load %arg1[%c0_2, %c0_3, %c0_4] : memref<2x1x32xf32, #tpu.memory_space<vmem>>, vector<1x1x32xf32>
    %11 = vector.shape_cast %10 : vector<1x1x32xf32> to vector<1x32xf32>
    %c0_5 = arith.constant 0 : index
    %c0_6 = arith.constant 0 : index
    %c0_7 = arith.constant 0 : index
    %12 = vector.load %arg2[%c0_5, %c0_6, %c0_7] : memref<2x1x32xf32, #tpu.memory_space<vmem>>, vector<1x1x32xf32>
    %13 = vector.shape_cast %12 : vector<1x1x32xf32> to vector<1x32xf32>
    %cst_8 = arith.constant dense<0.000000e+00> : vector<16xf32>
    %14 = vector.multi_reduction <add>, %0, %cst_8 [1] : vector<16x32xf32> to vector<16xf32>
    %15 = vector.shape_cast %14 : vector<16xf32> to vector<16x1xf32>
    %cst_9 = arith.constant 3.200000e+01 : f32
    %16 = vector.broadcast %cst_9 : f32 to vector<16x1xf32>
    %17 = arith.divf %15, %16 : vector<16x1xf32>
    %18 = vector.broadcast %17 : vector<16x1xf32> to vector<16x32xf32>
    %19 = arith.subf %0, %18 : vector<16x32xf32>
    %20 = arith.mulf %19, %19 : vector<16x32xf32>
    %cst_10 = arith.constant dense<0.000000e+00> : vector<16xf32>
    %21 = vector.multi_reduction <add>, %20, %cst_10 [1] : vector<16x32xf32> to vector<16xf32>
    %22 = vector.shape_cast %21 : vector<16xf32> to vector<16x1xf32>
    %cst_11 = arith.constant 3.200000e+01 : f32
    %23 = vector.broadcast %cst_11 : f32 to vector<16x1xf32>
    %24 = arith.divf %22, %23 : vector<16x1xf32>
    %25 = vector.broadcast %17 : vector<16x1xf32> to vector<16x32xf32>
    %26 = arith.subf %0, %25 : vector<16x32xf32>
    %cst_12 = arith.constant 9.99999974E-6 : f32
    %27 = vector.broadcast %cst_12 : f32 to vector<16x1xf32>
    %28 = arith.addf %24, %27 : vector<16x1xf32>
    %29 = math.sqrt %28 : vector<16x1xf32>
    %30 = vector.broadcast %29 : vector<16x1xf32> to vector<16x32xf32>
    %31 = arith.divf %26, %30 : vector<16x32xf32>
    %32 = vector.broadcast %11 : vector<1x32xf32> to vector<16x32xf32>
    %33 = arith.mulf %31, %32 : vector<16x32xf32>
    %34 = vector.broadcast %13 : vector<1x32xf32> to vector<16x32xf32>
    %35 = arith.addf %33, %34 : vector<16x32xf32>
    %c0_13 = arith.constant 0 : index
    %c0_14 = arith.constant 0 : index
    %c0_15 = arith.constant 0 : index
    %36 = vector.load %arg3[%c0_13, %c0_14, %c0_15] : memref<2x32x96xf32, #tpu.memory_space<vmem>>, vector<1x32x96xf32>
    %37 = vector.shape_cast %36 : vector<1x32x96xf32> to vector<32x96xf32>
    %cst_16 = arith.constant dense<0.000000e+00> : vector<16x96xf32>
    %38 = tpu.matmul %35, %37, %cst_16 {dimension_numbers = #tpu.dot_dimension_numbers<[1], [0], [0], [1], [0, 0, 1, 1], [], []>} : vector<16x32xf32>, vector<32x96xf32>, vector<16x96xf32> -> vector<16x96xf32>
    %39 = vector.shape_cast %38 : vector<16x96xf32> to vector<2x8x96xf32>
    %40 = vector.extract_strided_slice %39 {offsets = [0, 0, 0], sizes = [2, 8, 8], strides = [1, 1, 1]} : vector<2x8x96xf32> to vector<2x8x8xf32>
    %41 = vector.extract_strided_slice %39 {offsets = [0, 0, 32], sizes = [2, 8, 8], strides = [1, 1, 1]} : vector<2x8x96xf32> to vector<2x8x8xf32>
    %42 = vector.extract_strided_slice %39 {offsets = [0, 0, 64], sizes = [2, 8, 8], strides = [1, 1, 1]} : vector<2x8x96xf32> to vector<2x8x8xf32>
    "tpu.trace_start"() <{level = 10 : i32, message = "bqd,bkd->bqk"}> : () -> ()
    %cst_17 = arith.constant dense<0.000000e+00> : vector<2x8x8xf32>
    %43 = tpu.matmul %40, %41, %cst_17 {dimension_numbers = #tpu.dot_dimension_numbers<[2], [2], [1], [1], [0, 0, 0, 1, 1, 1], [0], [0]>} : vector<2x8x8xf32>, vector<2x8x8xf32>, vector<2x8x8xf32> -> vector<2x8x8xf32>
    "tpu.trace_stop"() : () -> ()
    %44 = arith.addf %43, %9 : vector<2x8x8xf32>
    %cst_18 = arith.constant dense<0xFF800000> : vector<2x8xf32>
    %45 = vector.multi_reduction <maximumf>, %44, %cst_18 [2] : vector<2x8x8xf32> to vector<2x8xf32>
    %46 = vector.shape_cast %45 : vector<2x8xf32> to vector<2x8x1xf32>
    %47 = vector.broadcast %46 : vector<2x8x1xf32> to vector<2x8x8xf32>
    %48 = arith.subf %44, %47 : vector<2x8x8xf32>
    %49 = math.exp %48 : vector<2x8x8xf32>
    %cst_19 = arith.constant dense<0.000000e+00> : vector<2x8xf32>
    %50 = vector.multi_reduction <add>, %49, %cst_19 [2] : vector<2x8x8xf32> to vector<2x8xf32>
    %51 = vector.shape_cast %50 : vector<2x8xf32> to vector<2x8x1xf32>
    %52 = tpu.reciprocal %51 {approx = true} : vector<2x8x1xf32> -> vector<2x8x1xf32>
    %53 = vector.broadcast %52 : vector<2x8x1xf32> to vector<2x8x8xf32>
    %54 = arith.mulf %49, %53 : vector<2x8x8xf32>
    "tpu.trace_start"() <{level = 10 : i32, message = "bqk,bkd->bqd"}> : () -> ()
    %cst_20 = arith.constant dense<0.000000e+00> : vector<2x8x8xf32>
    %55 = tpu.matmul %54, %42, %cst_20 {dimension_numbers = #tpu.dot_dimension_numbers<[2], [1], [1], [2], [0, 0, 0, 1, 1, 2], [0], [0]>} : vector<2x8x8xf32>, vector<2x8x8xf32>, vector<2x8x8xf32> -> vector<2x8x8xf32>
    "tpu.trace_stop"() : () -> ()
    %c0_21 = arith.constant 0 : index
    %c0_22 = arith.constant 0 : index
    %c0_23 = arith.constant 0 : index
    %c0_24 = arith.constant 0 : index
    %56 = vector.load %arg4[%c0_21, %c0_22, %c0_23, %c0_24] : memref<2x4x8x32xf32, #tpu.memory_space<vmem>>, vector<1x1x8x32xf32>
    %57 = vector.shape_cast %56 : vector<1x1x8x32xf32> to vector<8x32xf32>
    "tpu.trace_start"() <{level = 10 : i32, message = "btd,de->bte"}> : () -> ()
    %cst_25 = arith.constant dense<0.000000e+00> : vector<2x8x32xf32>
    %58 = tpu.matmul %55, %57, %cst_25 {dimension_numbers = #tpu.dot_dimension_numbers<[2], [0], [0, 1], [1], [0, 0, 0, 1, 1, 1], [], []>} : vector<2x8x8xf32>, vector<8x32xf32>, vector<2x8x32xf32> -> vector<2x8x32xf32>
    "tpu.trace_stop"() : () -> ()
    %59 = vector.extract_strided_slice %39 {offsets = [0, 0, 8], sizes = [2, 8, 8], strides = [1, 1, 1]} : vector<2x8x96xf32> to vector<2x8x8xf32>
    %60 = vector.extract_strided_slice %39 {offsets = [0, 0, 40], sizes = [2, 8, 8], strides = [1, 1, 1]} : vector<2x8x96xf32> to vector<2x8x8xf32>
    %61 = vector.extract_strided_slice %39 {offsets = [0, 0, 72], sizes = [2, 8, 8], strides = [1, 1, 1]} : vector<2x8x96xf32> to vector<2x8x8xf32>
    "tpu.trace_start"() <{level = 10 : i32, message = "bqd,bkd->bqk"}> : () -> ()
    %cst_26 = arith.constant dense<0.000000e+00> : vector<2x8x8xf32>
    %62 = tpu.matmul %59, %60, %cst_26 {dimension_numbers = #tpu.dot_dimension_numbers<[2], [2], [1], [1], [0, 0, 0, 1, 1, 1], [0], [0]>} : vector<2x8x8xf32>, vector<2x8x8xf32>, vector<2x8x8xf32> -> vector<2x8x8xf32>
    "tpu.trace_stop"() : () -> ()
    %63 = arith.addf %62, %9 : vector<2x8x8xf32>
    %cst_27 = arith.constant dense<0xFF800000> : vector<2x8xf32>
    %64 = vector.multi_reduction <maximumf>, %63, %cst_27 [2] : vector<2x8x8xf32> to vector<2x8xf32>
    %65 = vector.shape_cast %64 : vector<2x8xf32> to vector<2x8x1xf32>
    %66 = vector.broadcast %65 : vector<2x8x1xf32> to vector<2x8x8xf32>
    %67 = arith.subf %63, %66 : vector<2x8x8xf32>
    %68 = math.exp %67 : vector<2x8x8xf32>
    %cst_28 = arith.constant dense<0.000000e+00> : vector<2x8xf32>
    %69 = vector.multi_reduction <add>, %68, %cst_28 [2] : vector<2x8x8xf32> to vector<2x8xf32>
    %70 = vector.shape_cast %69 : vector<2x8xf32> to vector<2x8x1xf32>
    %71 = tpu.reciprocal %70 {approx = true} : vector<2x8x1xf32> -> vector<2x8x1xf32>
    %72 = vector.broadcast %71 : vector<2x8x1xf32> to vector<2x8x8xf32>
    %73 = arith.mulf %68, %72 : vector<2x8x8xf32>
    "tpu.trace_start"() <{level = 10 : i32, message = "bqk,bkd->bqd"}> : () -> ()
    %cst_29 = arith.constant dense<0.000000e+00> : vector<2x8x8xf32>
    %74 = tpu.matmul %73, %61, %cst_29 {dimension_numbers = #tpu.dot_dimension_numbers<[2], [1], [1], [2], [0, 0, 0, 1, 1, 2], [0], [0]>} : vector<2x8x8xf32>, vector<2x8x8xf32>, vector<2x8x8xf32> -> vector<2x8x8xf32>
    "tpu.trace_stop"() : () -> ()
    %c0_30 = arith.constant 0 : index
    %c1 = arith.constant 1 : index
    %c0_31 = arith.constant 0 : index
    %c0_32 = arith.constant 0 : index
    %75 = vector.load %arg4[%c0_30, %c1, %c0_31, %c0_32] : memref<2x4x8x32xf32, #tpu.memory_space<vmem>>, vector<1x1x8x32xf32>
    %76 = vector.shape_cast %75 : vector<1x1x8x32xf32> to vector<8x32xf32>
    "tpu.trace_start"() <{level = 10 : i32, message = "btd,de->bte"}> : () -> ()
    %cst_33 = arith.constant dense<0.000000e+00> : vector<2x8x32xf32>
    %77 = tpu.matmul %74, %76, %cst_33 {dimension_numbers = #tpu.dot_dimension_numbers<[2], [0], [0, 1], [1], [0, 0, 0, 1, 1, 1], [], []>} : vector<2x8x8xf32>, vector<8x32xf32>, vector<2x8x32xf32> -> vector<2x8x32xf32>
    "tpu.trace_stop"() : () -> ()
    %78 = arith.addf %58, %77 : vector<2x8x32xf32>
    %79 = vector.extract_strided_slice %39 {offsets = [0, 0, 16], sizes = [2, 8, 8], strides = [1, 1, 1]} : vector<2x8x96xf32> to vector<2x8x8xf32>
    %80 = vector.extract_strided_slice %39 {offsets = [0, 0, 48], sizes = [2, 8, 8], strides = [1, 1, 1]} : vector<2x8x96xf32> to vector<2x8x8xf32>
    %81 = vector.extract_strided_slice %39 {offsets = [0, 0, 80], sizes = [2, 8, 8], strides = [1, 1, 1]} : vector<2x8x96xf32> to vector<2x8x8xf32>
    "tpu.trace_start"() <{level = 10 : i32, message = "bqd,bkd->bqk"}> : () -> ()
    %cst_34 = arith.constant dense<0.000000e+00> : vector<2x8x8xf32>
    %82 = tpu.matmul %79, %80, %cst_34 {dimension_numbers = #tpu.dot_dimension_numbers<[2], [2], [1], [1], [0, 0, 0, 1, 1, 1], [0], [0]>} : vector<2x8x8xf32>, vector<2x8x8xf32>, vector<2x8x8xf32> -> vector<2x8x8xf32>
    "tpu.trace_stop"() : () -> ()
    %83 = arith.addf %82, %9 : vector<2x8x8xf32>
    %cst_35 = arith.constant dense<0xFF800000> : vector<2x8xf32>
    %84 = vector.multi_reduction <maximumf>, %83, %cst_35 [2] : vector<2x8x8xf32> to vector<2x8xf32>
    %85 = vector.shape_cast %84 : vector<2x8xf32> to vector<2x8x1xf32>
    %86 = vector.broadcast %85 : vector<2x8x1xf32> to vector<2x8x8xf32>
    %87 = arith.subf %83, %86 : vector<2x8x8xf32>
    %88 = math.exp %87 : vector<2x8x8xf32>
    %cst_36 = arith.constant dense<0.000000e+00> : vector<2x8xf32>
    %89 = vector.multi_reduction <add>, %88, %cst_36 [2] : vector<2x8x8xf32> to vector<2x8xf32>
    %90 = vector.shape_cast %89 : vector<2x8xf32> to vector<2x8x1xf32>
    %91 = tpu.reciprocal %90 {approx = true} : vector<2x8x1xf32> -> vector<2x8x1xf32>
    %92 = vector.broadcast %91 : vector<2x8x1xf32> to vector<2x8x8xf32>
    %93 = arith.mulf %88, %92 : vector<2x8x8xf32>
    "tpu.trace_start"() <{level = 10 : i32, message = "bqk,bkd->bqd"}> : () -> ()
    %cst_37 = arith.constant dense<0.000000e+00> : vector<2x8x8xf32>
    %94 = tpu.matmul %93, %81, %cst_37 {dimension_numbers = #tpu.dot_dimension_numbers<[2], [1], [1], [2], [0, 0, 0, 1, 1, 2], [0], [0]>} : vector<2x8x8xf32>, vector<2x8x8xf32>, vector<2x8x8xf32> -> vector<2x8x8xf32>
    "tpu.trace_stop"() : () -> ()
    %c0_38 = arith.constant 0 : index
    %c2 = arith.constant 2 : index
    %c0_39 = arith.constant 0 : index
    %c0_40 = arith.constant 0 : index
    %95 = vector.load %arg4[%c0_38, %c2, %c0_39, %c0_40] : memref<2x4x8x32xf32, #tpu.memory_space<vmem>>, vector<1x1x8x32xf32>
    %96 = vector.shape_cast %95 : vector<1x1x8x32xf32> to vector<8x32xf32>
    "tpu.trace_start"() <{level = 10 : i32, message = "btd,de->bte"}> : () -> ()
    %cst_41 = arith.constant dense<0.000000e+00> : vector<2x8x32xf32>
    %97 = tpu.matmul %94, %96, %cst_41 {dimension_numbers = #tpu.dot_dimension_numbers<[2], [0], [0, 1], [1], [0, 0, 0, 1, 1, 1], [], []>} : vector<2x8x8xf32>, vector<8x32xf32>, vector<2x8x32xf32> -> vector<2x8x32xf32>
    "tpu.trace_stop"() : () -> ()
    %98 = arith.addf %78, %97 : vector<2x8x32xf32>
    %99 = vector.extract_strided_slice %39 {offsets = [0, 0, 24], sizes = [2, 8, 8], strides = [1, 1, 1]} : vector<2x8x96xf32> to vector<2x8x8xf32>
    %100 = vector.extract_strided_slice %39 {offsets = [0, 0, 56], sizes = [2, 8, 8], strides = [1, 1, 1]} : vector<2x8x96xf32> to vector<2x8x8xf32>
    %101 = vector.extract_strided_slice %39 {offsets = [0, 0, 88], sizes = [2, 8, 8], strides = [1, 1, 1]} : vector<2x8x96xf32> to vector<2x8x8xf32>
    "tpu.trace_start"() <{level = 10 : i32, message = "bqd,bkd->bqk"}> : () -> ()
    %cst_42 = arith.constant dense<0.000000e+00> : vector<2x8x8xf32>
    %102 = tpu.matmul %99, %100, %cst_42 {dimension_numbers = #tpu.dot_dimension_numbers<[2], [2], [1], [1], [0, 0, 0, 1, 1, 1], [0], [0]>} : vector<2x8x8xf32>, vector<2x8x8xf32>, vector<2x8x8xf32> -> vector<2x8x8xf32>
    "tpu.trace_stop"() : () -> ()
    %103 = arith.addf %102, %9 : vector<2x8x8xf32>
    %cst_43 = arith.constant dense<0xFF800000> : vector<2x8xf32>
    %104 = vector.multi_reduction <maximumf>, %103, %cst_43 [2] : vector<2x8x8xf32> to vector<2x8xf32>
    %105 = vector.shape_cast %104 : vector<2x8xf32> to vector<2x8x1xf32>
    %106 = vector.broadcast %105 : vector<2x8x1xf32> to vector<2x8x8xf32>
    %107 = arith.subf %103, %106 : vector<2x8x8xf32>
    %108 = math.exp %107 : vector<2x8x8xf32>
    %cst_44 = arith.constant dense<0.000000e+00> : vector<2x8xf32>
    %109 = vector.multi_reduction <add>, %108, %cst_44 [2] : vector<2x8x8xf32> to vector<2x8xf32>
    %110 = vector.shape_cast %109 : vector<2x8xf32> to vector<2x8x1xf32>
    %111 = tpu.reciprocal %110 {approx = true} : vector<2x8x1xf32> -> vector<2x8x1xf32>
    %112 = vector.broadcast %111 : vector<2x8x1xf32> to vector<2x8x8xf32>
    %113 = arith.mulf %108, %112 : vector<2x8x8xf32>
    "tpu.trace_start"() <{level = 10 : i32, message = "bqk,bkd->bqd"}> : () -> ()
    %cst_45 = arith.constant dense<0.000000e+00> : vector<2x8x8xf32>
    %114 = tpu.matmul %113, %101, %cst_45 {dimension_numbers = #tpu.dot_dimension_numbers<[2], [1], [1], [2], [0, 0, 0, 1, 1, 2], [0], [0]>} : vector<2x8x8xf32>, vector<2x8x8xf32>, vector<2x8x8xf32> -> vector<2x8x8xf32>
    "tpu.trace_stop"() : () -> ()
    %c0_46 = arith.constant 0 : index
    %c3 = arith.constant 3 : index
    %c0_47 = arith.constant 0 : index
    %c0_48 = arith.constant 0 : index
    %115 = vector.load %arg4[%c0_46, %c3, %c0_47, %c0_48] : memref<2x4x8x32xf32, #tpu.memory_space<vmem>>, vector<1x1x8x32xf32>
    %116 = vector.shape_cast %115 : vector<1x1x8x32xf32> to vector<8x32xf32>
    "tpu.trace_start"() <{level = 10 : i32, message = "btd,de->bte"}> : () -> ()
    %cst_49 = arith.constant dense<0.000000e+00> : vector<2x8x32xf32>
    %117 = tpu.matmul %114, %116, %cst_49 {dimension_numbers = #tpu.dot_dimension_numbers<[2], [0], [0, 1], [1], [0, 0, 0, 1, 1, 1], [], []>} : vector<2x8x8xf32>, vector<8x32xf32>, vector<2x8x32xf32> -> vector<2x8x32xf32>
    "tpu.trace_stop"() : () -> ()
    %118 = arith.addf %98, %117 : vector<2x8x32xf32>
    %119 = vector.shape_cast %118 : vector<2x8x32xf32> to vector<16x32xf32>
    %120 = arith.addf %0, %119 : vector<16x32xf32>
    %c0_50 = arith.constant 0 : index
    %c0_51 = arith.constant 0 : index
    %c0_52 = arith.constant 0 : index
    %121 = vector.load %arg5[%c0_50, %c0_51, %c0_52] : memref<2x1x32xf32, #tpu.memory_space<vmem>>, vector<1x1x32xf32>
    %122 = vector.shape_cast %121 : vector<1x1x32xf32> to vector<1x32xf32>
    %123 = vector.broadcast %122 : vector<1x32xf32> to vector<16x32xf32>
    %124 = arith.addf %120, %123 : vector<16x32xf32>
    %c0_53 = arith.constant 0 : index
    %c0_54 = arith.constant 0 : index
    %c0_55 = arith.constant 0 : index
    %125 = vector.load %arg6[%c0_53, %c0_54, %c0_55] : memref<2x1x32xf32, #tpu.memory_space<vmem>>, vector<1x1x32xf32>
    %126 = vector.shape_cast %125 : vector<1x1x32xf32> to vector<1x32xf32>
    %c0_56 = arith.constant 0 : index
    %c0_57 = arith.constant 0 : index
    %c0_58 = arith.constant 0 : index
    %127 = vector.load %arg7[%c0_56, %c0_57, %c0_58] : memref<2x1x32xf32, #tpu.memory_space<vmem>>, vector<1x1x32xf32>
    %128 = vector.shape_cast %127 : vector<1x1x32xf32> to vector<1x32xf32>
    %cst_59 = arith.constant dense<0.000000e+00> : vector<16xf32>
    %129 = vector.multi_reduction <add>, %124, %cst_59 [1] : vector<16x32xf32> to vector<16xf32>
    %130 = vector.shape_cast %129 : vector<16xf32> to vector<16x1xf32>
    %cst_60 = arith.constant 3.200000e+01 : f32
    %131 = vector.broadcast %cst_60 : f32 to vector<16x1xf32>
    %132 = arith.divf %130, %131 : vector<16x1xf32>
    %133 = vector.broadcast %132 : vector<16x1xf32> to vector<16x32xf32>
    %134 = arith.subf %124, %133 : vector<16x32xf32>
    %135 = arith.mulf %134, %134 : vector<16x32xf32>
    %cst_61 = arith.constant dense<0.000000e+00> : vector<16xf32>
    %136 = vector.multi_reduction <add>, %135, %cst_61 [1] : vector<16x32xf32> to vector<16xf32>
    %137 = vector.shape_cast %136 : vector<16xf32> to vector<16x1xf32>
    %cst_62 = arith.constant 3.200000e+01 : f32
    %138 = vector.broadcast %cst_62 : f32 to vector<16x1xf32>
    %139 = arith.divf %137, %138 : vector<16x1xf32>
    %140 = vector.broadcast %132 : vector<16x1xf32> to vector<16x32xf32>
    %141 = arith.subf %124, %140 : vector<16x32xf32>
    %cst_63 = arith.constant 9.99999974E-6 : f32
    %142 = vector.broadcast %cst_63 : f32 to vector<16x1xf32>
    %143 = arith.addf %139, %142 : vector<16x1xf32>
    %144 = math.sqrt %143 : vector<16x1xf32>
    %145 = vector.broadcast %144 : vector<16x1xf32> to vector<16x32xf32>
    %146 = arith.divf %141, %145 : vector<16x32xf32>
    %147 = vector.broadcast %126 : vector<1x32xf32> to vector<16x32xf32>
    %148 = arith.mulf %146, %147 : vector<16x32xf32>
    %149 = vector.broadcast %128 : vector<1x32xf32> to vector<16x32xf32>
    %150 = arith.addf %148, %149 : vector<16x32xf32>
    %c0_64 = arith.constant 0 : index
    %c0_65 = arith.constant 0 : index
    %c0_66 = arith.constant 0 : index
    %151 = vector.load %arg8[%c0_64, %c0_65, %c0_66] : memref<2x32x128xf32, #tpu.memory_space<vmem>>, vector<1x32x128xf32>
    %152 = vector.shape_cast %151 : vector<1x32x128xf32> to vector<32x128xf32>
    %cst_67 = arith.constant dense<0.000000e+00> : vector<16x128xf32>
    %153 = tpu.matmul %150, %152, %cst_67 {dimension_numbers = #tpu.dot_dimension_numbers<[1], [0], [0], [1], [0, 0, 1, 1], [], []>} : vector<16x32xf32>, vector<32x128xf32>, vector<16x128xf32> -> vector<16x128xf32>
    %c0_68 = arith.constant 0 : index
    %c0_69 = arith.constant 0 : index
    %c0_70 = arith.constant 0 : index
    %154 = vector.load %arg9[%c0_68, %c0_69, %c0_70] : memref<2x1x128xf32, #tpu.memory_space<vmem>>, vector<1x1x128xf32>
    %155 = vector.shape_cast %154 : vector<1x1x128xf32> to vector<1x128xf32>
    %156 = vector.broadcast %155 : vector<1x128xf32> to vector<16x128xf32>
    %157 = arith.addf %153, %156 : vector<16x128xf32>
    %cst_71 = arith.constant 5.000000e-01 : f32
    %158 = vector.broadcast %cst_71 : f32 to vector<16x128xf32>
    %159 = arith.mulf %158, %157 : vector<16x128xf32>
    %cst_72 = arith.constant 0.636619746 : f32
    %160 = math.sqrt %cst_72 : f32
    %161 = arith.mulf %157, %157 : vector<16x128xf32>
    %162 = arith.mulf %157, %161 : vector<16x128xf32>
    %cst_73 = arith.constant 4.471500e-02 : f32
    %163 = vector.broadcast %cst_73 : f32 to vector<16x128xf32>
    %164 = arith.mulf %163, %162 : vector<16x128xf32>
    %165 = arith.addf %157, %164 : vector<16x128xf32>
    %166 = vector.broadcast %160 : f32 to vector<16x128xf32>
    %167 = arith.mulf %166, %165 : vector<16x128xf32>
    %168 = math.tanh %167 : vector<16x128xf32>
    %cst_74 = arith.constant 1.000000e+00 : f32
    %169 = vector.broadcast %cst_74 : f32 to vector<16x128xf32>
    %170 = arith.addf %169, %168 : vector<16x128xf32>
    %171 = arith.mulf %159, %170 : vector<16x128xf32>
    %c0_75 = arith.constant 0 : index
    %c0_76 = arith.constant 0 : index
    %c0_77 = arith.constant 0 : index
    %172 = vector.load %arg10[%c0_75, %c0_76, %c0_77] : memref<2x128x32xf32, #tpu.memory_space<vmem>>, vector<1x128x32xf32>
    %173 = vector.shape_cast %172 : vector<1x128x32xf32> to vector<128x32xf32>
    %cst_78 = arith.constant dense<0.000000e+00> : vector<16x32xf32>
    %174 = tpu.matmul %171, %173, %cst_78 {dimension_numbers = #tpu.dot_dimension_numbers<[1], [0], [0], [1], [0, 0, 1, 1], [], []>} : vector<16x128xf32>, vector<128x32xf32>, vector<16x32xf32> -> vector<16x32xf32>
    %175 = arith.addf %124, %174 : vector<16x32xf32>
    %c0_79 = arith.constant 0 : index
    %c0_80 = arith.constant 0 : index
    %c0_81 = arith.constant 0 : index
    %176 = vector.load %arg11[%c0_79, %c0_80, %c0_81] : memref<2x1x32xf32, #tpu.memory_space<vmem>>, vector<1x1x32xf32>
    %177 = vector.shape_cast %176 : vector<1x1x32xf32> to vector<1x32xf32>
    %178 = vector.broadcast %177 : vector<1x32xf32> to vector<16x32xf32>
    %179 = arith.addf %175, %178 : vector<16x32xf32>
    %c1_82 = arith.constant 1 : index
    %c0_83 = arith.constant 0 : index
    %c0_84 = arith.constant 0 : index
    %180 = vector.load %arg1[%c1_82, %c0_83, %c0_84] : memref<2x1x32xf32, #tpu.memory_space<vmem>>, vector<1x1x32xf32>
    %181 = vector.shape_cast %180 : vector<1x1x32xf32> to vector<1x32xf32>
    %c1_85 = arith.constant 1 : index
    %c0_86 = arith.constant 0 : index
    %c0_87 = arith.constant 0 : index
    %182 = vector.load %arg2[%c1_85, %c0_86, %c0_87] : memref<2x1x32xf32, #tpu.memory_space<vmem>>, vector<1x1x32xf32>
    %183 = vector.shape_cast %182 : vector<1x1x32xf32> to vector<1x32xf32>
    %cst_88 = arith.constant dense<0.000000e+00> : vector<16xf32>
    %184 = vector.multi_reduction <add>, %179, %cst_88 [1] : vector<16x32xf32> to vector<16xf32>
    %185 = vector.shape_cast %184 : vector<16xf32> to vector<16x1xf32>
    %cst_89 = arith.constant 3.200000e+01 : f32
    %186 = vector.broadcast %cst_89 : f32 to vector<16x1xf32>
    %187 = arith.divf %185, %186 : vector<16x1xf32>
    %188 = vector.broadcast %187 : vector<16x1xf32> to vector<16x32xf32>
    %189 = arith.subf %179, %188 : vector<16x32xf32>
    %190 = arith.mulf %189, %189 : vector<16x32xf32>
    %cst_90 = arith.constant dense<0.000000e+00> : vector<16xf32>
    %191 = vector.multi_reduction <add>, %190, %cst_90 [1] : vector<16x32xf32> to vector<16xf32>
    %192 = vector.shape_cast %191 : vector<16xf32> to vector<16x1xf32>
    %cst_91 = arith.constant 3.200000e+01 : f32
    %193 = vector.broadcast %cst_91 : f32 to vector<16x1xf32>
    %194 = arith.divf %192, %193 : vector<16x1xf32>
    %195 = vector.broadcast %187 : vector<16x1xf32> to vector<16x32xf32>
    %196 = arith.subf %179, %195 : vector<16x32xf32>
    %cst_92 = arith.constant 9.99999974E-6 : f32
    %197 = vector.broadcast %cst_92 : f32 to vector<16x1xf32>
    %198 = arith.addf %194, %197 : vector<16x1xf32>
    %199 = math.sqrt %198 : vector<16x1xf32>
    %200 = vector.broadcast %199 : vector<16x1xf32> to vector<16x32xf32>
    %201 = arith.divf %196, %200 : vector<16x32xf32>
    %202 = vector.broadcast %181 : vector<1x32xf32> to vector<16x32xf32>
    %203 = arith.mulf %201, %202 : vector<16x32xf32>
    %204 = vector.broadcast %183 : vector<1x32xf32> to vector<16x32xf32>
    %205 = arith.addf %203, %204 : vector<16x32xf32>
    %c1_93 = arith.constant 1 : index
    %c0_94 = arith.constant 0 : index
    %c0_95 = arith.constant 0 : index
    %206 = vector.load %arg3[%c1_93, %c0_94, %c0_95] : memref<2x32x96xf32, #tpu.memory_space<vmem>>, vector<1x32x96xf32>
    %207 = vector.shape_cast %206 : vector<1x32x96xf32> to vector<32x96xf32>
    %cst_96 = arith.constant dense<0.000000e+00> : vector<16x96xf32>
    %208 = tpu.matmul %205, %207, %cst_96 {dimension_numbers = #tpu.dot_dimension_numbers<[1], [0], [0], [1], [0, 0, 1, 1], [], []>} : vector<16x32xf32>, vector<32x96xf32>, vector<16x96xf32> -> vector<16x96xf32>
    %209 = vector.shape_cast %208 : vector<16x96xf32> to vector<2x8x96xf32>
    %210 = vector.extract_strided_slice %209 {offsets = [0, 0, 0], sizes = [2, 8, 8], strides = [1, 1, 1]} : vector<2x8x96xf32> to vector<2x8x8xf32>
    %211 = vector.extract_strided_slice %209 {offsets = [0, 0, 32], sizes = [2, 8, 8], strides = [1, 1, 1]} : vector<2x8x96xf32> to vector<2x8x8xf32>
    %212 = vector.extract_strided_slice %209 {offsets = [0, 0, 64], sizes = [2, 8, 8], strides = [1, 1, 1]} : vector<2x8x96xf32> to vector<2x8x8xf32>
    "tpu.trace_start"() <{level = 10 : i32, message = "bqd,bkd->bqk"}> : () -> ()
    %cst_97 = arith.constant dense<0.000000e+00> : vector<2x8x8xf32>
    %213 = tpu.matmul %210, %211, %cst_97 {dimension_numbers = #tpu.dot_dimension_numbers<[2], [2], [1], [1], [0, 0, 0, 1, 1, 1], [0], [0]>} : vector<2x8x8xf32>, vector<2x8x8xf32>, vector<2x8x8xf32> -> vector<2x8x8xf32>
    "tpu.trace_stop"() : () -> ()
    %214 = arith.addf %213, %9 : vector<2x8x8xf32>
    %cst_98 = arith.constant dense<0xFF800000> : vector<2x8xf32>
    %215 = vector.multi_reduction <maximumf>, %214, %cst_98 [2] : vector<2x8x8xf32> to vector<2x8xf32>
    %216 = vector.shape_cast %215 : vector<2x8xf32> to vector<2x8x1xf32>
    %217 = vector.broadcast %216 : vector<2x8x1xf32> to vector<2x8x8xf32>
    %218 = arith.subf %214, %217 : vector<2x8x8xf32>
    %219 = math.exp %218 : vector<2x8x8xf32>
    %cst_99 = arith.constant dense<0.000000e+00> : vector<2x8xf32>
    %220 = vector.multi_reduction <add>, %219, %cst_99 [2] : vector<2x8x8xf32> to vector<2x8xf32>
    %221 = vector.shape_cast %220 : vector<2x8xf32> to vector<2x8x1xf32>
    %222 = tpu.reciprocal %221 {approx = true} : vector<2x8x1xf32> -> vector<2x8x1xf32>
    %223 = vector.broadcast %222 : vector<2x8x1xf32> to vector<2x8x8xf32>
    %224 = arith.mulf %219, %223 : vector<2x8x8xf32>
    "tpu.trace_start"() <{level = 10 : i32, message = "bqk,bkd->bqd"}> : () -> ()
    %cst_100 = arith.constant dense<0.000000e+00> : vector<2x8x8xf32>
    %225 = tpu.matmul %224, %212, %cst_100 {dimension_numbers = #tpu.dot_dimension_numbers<[2], [1], [1], [2], [0, 0, 0, 1, 1, 2], [0], [0]>} : vector<2x8x8xf32>, vector<2x8x8xf32>, vector<2x8x8xf32> -> vector<2x8x8xf32>
    "tpu.trace_stop"() : () -> ()
    %c1_101 = arith.constant 1 : index
    %c0_102 = arith.constant 0 : index
    %c0_103 = arith.constant 0 : index
    %c0_104 = arith.constant 0 : index
    %226 = vector.load %arg4[%c1_101, %c0_102, %c0_103, %c0_104] : memref<2x4x8x32xf32, #tpu.memory_space<vmem>>, vector<1x1x8x32xf32>
    %227 = vector.shape_cast %226 : vector<1x1x8x32xf32> to vector<8x32xf32>
    "tpu.trace_start"() <{level = 10 : i32, message = "btd,de->bte"}> : () -> ()
    %cst_105 = arith.constant dense<0.000000e+00> : vector<2x8x32xf32>
    %228 = tpu.matmul %225, %227, %cst_105 {dimension_numbers = #tpu.dot_dimension_numbers<[2], [0], [0, 1], [1], [0, 0, 0, 1, 1, 1], [], []>} : vector<2x8x8xf32>, vector<8x32xf32>, vector<2x8x32xf32> -> vector<2x8x32xf32>
    "tpu.trace_stop"() : () -> ()
    %229 = vector.extract_strided_slice %209 {offsets = [0, 0, 8], sizes = [2, 8, 8], strides = [1, 1, 1]} : vector<2x8x96xf32> to vector<2x8x8xf32>
    %230 = vector.extract_strided_slice %209 {offsets = [0, 0, 40], sizes = [2, 8, 8], strides = [1, 1, 1]} : vector<2x8x96xf32> to vector<2x8x8xf32>
    %231 = vector.extract_strided_slice %209 {offsets = [0, 0, 72], sizes = [2, 8, 8], strides = [1, 1, 1]} : vector<2x8x96xf32> to vector<2x8x8xf32>
    "tpu.trace_start"() <{level = 10 : i32, message = "bqd,bkd->bqk"}> : () -> ()
    %cst_106 = arith.constant dense<0.000000e+00> : vector<2x8x8xf32>
    %232 = tpu.matmul %229, %230, %cst_106 {dimension_numbers = #tpu.dot_dimension_numbers<[2], [2], [1], [1], [0, 0, 0, 1, 1, 1], [0], [0]>} : vector<2x8x8xf32>, vector<2x8x8xf32>, vector<2x8x8xf32> -> vector<2x8x8xf32>
    "tpu.trace_stop"() : () -> ()
    %233 = arith.addf %232, %9 : vector<2x8x8xf32>
    %cst_107 = arith.constant dense<0xFF800000> : vector<2x8xf32>
    %234 = vector.multi_reduction <maximumf>, %233, %cst_107 [2] : vector<2x8x8xf32> to vector<2x8xf32>
    %235 = vector.shape_cast %234 : vector<2x8xf32> to vector<2x8x1xf32>
    %236 = vector.broadcast %235 : vector<2x8x1xf32> to vector<2x8x8xf32>
    %237 = arith.subf %233, %236 : vector<2x8x8xf32>
    %238 = math.exp %237 : vector<2x8x8xf32>
    %cst_108 = arith.constant dense<0.000000e+00> : vector<2x8xf32>
    %239 = vector.multi_reduction <add>, %238, %cst_108 [2] : vector<2x8x8xf32> to vector<2x8xf32>
    %240 = vector.shape_cast %239 : vector<2x8xf32> to vector<2x8x1xf32>
    %241 = tpu.reciprocal %240 {approx = true} : vector<2x8x1xf32> -> vector<2x8x1xf32>
    %242 = vector.broadcast %241 : vector<2x8x1xf32> to vector<2x8x8xf32>
    %243 = arith.mulf %238, %242 : vector<2x8x8xf32>
    "tpu.trace_start"() <{level = 10 : i32, message = "bqk,bkd->bqd"}> : () -> ()
    %cst_109 = arith.constant dense<0.000000e+00> : vector<2x8x8xf32>
    %244 = tpu.matmul %243, %231, %cst_109 {dimension_numbers = #tpu.dot_dimension_numbers<[2], [1], [1], [2], [0, 0, 0, 1, 1, 2], [0], [0]>} : vector<2x8x8xf32>, vector<2x8x8xf32>, vector<2x8x8xf32> -> vector<2x8x8xf32>
    "tpu.trace_stop"() : () -> ()
    %c1_110 = arith.constant 1 : index
    %c1_111 = arith.constant 1 : index
    %c0_112 = arith.constant 0 : index
    %c0_113 = arith.constant 0 : index
    %245 = vector.load %arg4[%c1_110, %c1_111, %c0_112, %c0_113] : memref<2x4x8x32xf32, #tpu.memory_space<vmem>>, vector<1x1x8x32xf32>
    %246 = vector.shape_cast %245 : vector<1x1x8x32xf32> to vector<8x32xf32>
    "tpu.trace_start"() <{level = 10 : i32, message = "btd,de->bte"}> : () -> ()
    %cst_114 = arith.constant dense<0.000000e+00> : vector<2x8x32xf32>
    %247 = tpu.matmul %244, %246, %cst_114 {dimension_numbers = #tpu.dot_dimension_numbers<[2], [0], [0, 1], [1], [0, 0, 0, 1, 1, 1], [], []>} : vector<2x8x8xf32>, vector<8x32xf32>, vector<2x8x32xf32> -> vector<2x8x32xf32>
    "tpu.trace_stop"() : () -> ()
    %248 = arith.addf %228, %247 : vector<2x8x32xf32>
    %249 = vector.extract_strided_slice %209 {offsets = [0, 0, 16], sizes = [2, 8, 8], strides = [1, 1, 1]} : vector<2x8x96xf32> to vector<2x8x8xf32>
    %250 = vector.extract_strided_slice %209 {offsets = [0, 0, 48], sizes = [2, 8, 8], strides = [1, 1, 1]} : vector<2x8x96xf32> to vector<2x8x8xf32>
    %251 = vector.extract_strided_slice %209 {offsets = [0, 0, 80], sizes = [2, 8, 8], strides = [1, 1, 1]} : vector<2x8x96xf32> to vector<2x8x8xf32>
    "tpu.trace_start"() <{level = 10 : i32, message = "bqd,bkd->bqk"}> : () -> ()
    %cst_115 = arith.constant dense<0.000000e+00> : vector<2x8x8xf32>
    %252 = tpu.matmul %249, %250, %cst_115 {dimension_numbers = #tpu.dot_dimension_numbers<[2], [2], [1], [1], [0, 0, 0, 1, 1, 1], [0], [0]>} : vector<2x8x8xf32>, vector<2x8x8xf32>, vector<2x8x8xf32> -> vector<2x8x8xf32>
    "tpu.trace_stop"() : () -> ()
    %253 = arith.addf %252, %9 : vector<2x8x8xf32>
    %cst_116 = arith.constant dense<0xFF800000> : vector<2x8xf32>
    %254 = vector.multi_reduction <maximumf>, %253, %cst_116 [2] : vector<2x8x8xf32> to vector<2x8xf32>
    %255 = vector.shape_cast %254 : vector<2x8xf32> to vector<2x8x1xf32>
    %256 = vector.broadcast %255 : vector<2x8x1xf32> to vector<2x8x8xf32>
    %257 = arith.subf %253, %256 : vector<2x8x8xf32>
    %258 = math.exp %257 : vector<2x8x8xf32>
    %cst_117 = arith.constant dense<0.000000e+00> : vector<2x8xf32>
    %259 = vector.multi_reduction <add>, %258, %cst_117 [2] : vector<2x8x8xf32> to vector<2x8xf32>
    %260 = vector.shape_cast %259 : vector<2x8xf32> to vector<2x8x1xf32>
    %261 = tpu.reciprocal %260 {approx = true} : vector<2x8x1xf32> -> vector<2x8x1xf32>
    %262 = vector.broadcast %261 : vector<2x8x1xf32> to vector<2x8x8xf32>
    %263 = arith.mulf %258, %262 : vector<2x8x8xf32>
    "tpu.trace_start"() <{level = 10 : i32, message = "bqk,bkd->bqd"}> : () -> ()
    %cst_118 = arith.constant dense<0.000000e+00> : vector<2x8x8xf32>
    %264 = tpu.matmul %263, %251, %cst_118 {dimension_numbers = #tpu.dot_dimension_numbers<[2], [1], [1], [2], [0, 0, 0, 1, 1, 2], [0], [0]>} : vector<2x8x8xf32>, vector<2x8x8xf32>, vector<2x8x8xf32> -> vector<2x8x8xf32>
    "tpu.trace_stop"() : () -> ()
    %c1_119 = arith.constant 1 : index
    %c2_120 = arith.constant 2 : index
    %c0_121 = arith.constant 0 : index
    %c0_122 = arith.constant 0 : index
    %265 = vector.load %arg4[%c1_119, %c2_120, %c0_121, %c0_122] : memref<2x4x8x32xf32, #tpu.memory_space<vmem>>, vector<1x1x8x32xf32>
    %266 = vector.shape_cast %265 : vector<1x1x8x32xf32> to vector<8x32xf32>
    "tpu.trace_start"() <{level = 10 : i32, message = "btd,de->bte"}> : () -> ()
    %cst_123 = arith.constant dense<0.000000e+00> : vector<2x8x32xf32>
    %267 = tpu.matmul %264, %266, %cst_123 {dimension_numbers = #tpu.dot_dimension_numbers<[2], [0], [0, 1], [1], [0, 0, 0, 1, 1, 1], [], []>} : vector<2x8x8xf32>, vector<8x32xf32>, vector<2x8x32xf32> -> vector<2x8x32xf32>
    "tpu.trace_stop"() : () -> ()
    %268 = arith.addf %248, %267 : vector<2x8x32xf32>
    %269 = vector.extract_strided_slice %209 {offsets = [0, 0, 24], sizes = [2, 8, 8], strides = [1, 1, 1]} : vector<2x8x96xf32> to vector<2x8x8xf32>
    %270 = vector.extract_strided_slice %209 {offsets = [0, 0, 56], sizes = [2, 8, 8], strides = [1, 1, 1]} : vector<2x8x96xf32> to vector<2x8x8xf32>
    %271 = vector.extract_strided_slice %209 {offsets = [0, 0, 88], sizes = [2, 8, 8], strides = [1, 1, 1]} : vector<2x8x96xf32> to vector<2x8x8xf32>
    "tpu.trace_start"() <{level = 10 : i32, message = "bqd,bkd->bqk"}> : () -> ()
    %cst_124 = arith.constant dense<0.000000e+00> : vector<2x8x8xf32>
    %272 = tpu.matmul %269, %270, %cst_124 {dimension_numbers = #tpu.dot_dimension_numbers<[2], [2], [1], [1], [0, 0, 0, 1, 1, 1], [0], [0]>} : vector<2x8x8xf32>, vector<2x8x8xf32>, vector<2x8x8xf32> -> vector<2x8x8xf32>
    "tpu.trace_stop"() : () -> ()
    %273 = arith.addf %272, %9 : vector<2x8x8xf32>
    %cst_125 = arith.constant dense<0xFF800000> : vector<2x8xf32>
    %274 = vector.multi_reduction <maximumf>, %273, %cst_125 [2] : vector<2x8x8xf32> to vector<2x8xf32>
    %275 = vector.shape_cast %274 : vector<2x8xf32> to vector<2x8x1xf32>
    %276 = vector.broadcast %275 : vector<2x8x1xf32> to vector<2x8x8xf32>
    %277 = arith.subf %273, %276 : vector<2x8x8xf32>
    %278 = math.exp %277 : vector<2x8x8xf32>
    %cst_126 = arith.constant dense<0.000000e+00> : vector<2x8xf32>
    %279 = vector.multi_reduction <add>, %278, %cst_126 [2] : vector<2x8x8xf32> to vector<2x8xf32>
    %280 = vector.shape_cast %279 : vector<2x8xf32> to vector<2x8x1xf32>
    %281 = tpu.reciprocal %280 {approx = true} : vector<2x8x1xf32> -> vector<2x8x1xf32>
    %282 = vector.broadcast %281 : vector<2x8x1xf32> to vector<2x8x8xf32>
    %283 = arith.mulf %278, %282 : vector<2x8x8xf32>
    "tpu.trace_start"() <{level = 10 : i32, message = "bqk,bkd->bqd"}> : () -> ()
    %cst_127 = arith.constant dense<0.000000e+00> : vector<2x8x8xf32>
    %284 = tpu.matmul %283, %271, %cst_127 {dimension_numbers = #tpu.dot_dimension_numbers<[2], [1], [1], [2], [0, 0, 0, 1, 1, 2], [0], [0]>} : vector<2x8x8xf32>, vector<2x8x8xf32>, vector<2x8x8xf32> -> vector<2x8x8xf32>
    "tpu.trace_stop"() : () -> ()
    %c1_128 = arith.constant 1 : index
    %c3_129 = arith.constant 3 : index
    %c0_130 = arith.constant 0 : index
    %c0_131 = arith.constant 0 : index
    %285 = vector.load %arg4[%c1_128, %c3_129, %c0_130, %c0_131] : memref<2x4x8x32xf32, #tpu.memory_space<vmem>>, vector<1x1x8x32xf32>
    %286 = vector.shape_cast %285 : vector<1x1x8x32xf32> to vector<8x32xf32>
    "tpu.trace_start"() <{level = 10 : i32, message = "btd,de->bte"}> : () -> ()
    %cst_132 = arith.constant dense<0.000000e+00> : vector<2x8x32xf32>
    %287 = tpu.matmul %284, %286, %cst_132 {dimension_numbers = #tpu.dot_dimension_numbers<[2], [0], [0, 1], [1], [0, 0, 0, 1, 1, 1], [], []>} : vector<2x8x8xf32>, vector<8x32xf32>, vector<2x8x32xf32> -> vector<2x8x32xf32>
    "tpu.trace_stop"() : () -> ()
    %288 = arith.addf %268, %287 : vector<2x8x32xf32>
    %289 = vector.shape_cast %288 : vector<2x8x32xf32> to vector<16x32xf32>
    %290 = arith.addf %179, %289 : vector<16x32xf32>
    %c1_133 = arith.constant 1 : index
    %c0_134 = arith.constant 0 : index
    %c0_135 = arith.constant 0 : index
    %291 = vector.load %arg5[%c1_133, %c0_134, %c0_135] : memref<2x1x32xf32, #tpu.memory_space<vmem>>, vector<1x1x32xf32>
    %292 = vector.shape_cast %291 : vector<1x1x32xf32> to vector<1x32xf32>
    %293 = vector.broadcast %292 : vector<1x32xf32> to vector<16x32xf32>
    %294 = arith.addf %290, %293 : vector<16x32xf32>
    %c1_136 = arith.constant 1 : index
    %c0_137 = arith.constant 0 : index
    %c0_138 = arith.constant 0 : index
    %295 = vector.load %arg6[%c1_136, %c0_137, %c0_138] : memref<2x1x32xf32, #tpu.memory_space<vmem>>, vector<1x1x32xf32>
    %296 = vector.shape_cast %295 : vector<1x1x32xf32> to vector<1x32xf32>
    %c1_139 = arith.constant 1 : index
    %c0_140 = arith.constant 0 : index
    %c0_141 = arith.constant 0 : index
    %297 = vector.load %arg7[%c1_139, %c0_140, %c0_141] : memref<2x1x32xf32, #tpu.memory_space<vmem>>, vector<1x1x32xf32>
    %298 = vector.shape_cast %297 : vector<1x1x32xf32> to vector<1x32xf32>
    %cst_142 = arith.constant dense<0.000000e+00> : vector<16xf32>
    %299 = vector.multi_reduction <add>, %294, %cst_142 [1] : vector<16x32xf32> to vector<16xf32>
    %300 = vector.shape_cast %299 : vector<16xf32> to vector<16x1xf32>
    %cst_143 = arith.constant 3.200000e+01 : f32
    %301 = vector.broadcast %cst_143 : f32 to vector<16x1xf32>
    %302 = arith.divf %300, %301 : vector<16x1xf32>
    %303 = vector.broadcast %302 : vector<16x1xf32> to vector<16x32xf32>
    %304 = arith.subf %294, %303 : vector<16x32xf32>
    %305 = arith.mulf %304, %304 : vector<16x32xf32>
    %cst_144 = arith.constant dense<0.000000e+00> : vector<16xf32>
    %306 = vector.multi_reduction <add>, %305, %cst_144 [1] : vector<16x32xf32> to vector<16xf32>
    %307 = vector.shape_cast %306 : vector<16xf32> to vector<16x1xf32>
    %cst_145 = arith.constant 3.200000e+01 : f32
    %308 = vector.broadcast %cst_145 : f32 to vector<16x1xf32>
    %309 = arith.divf %307, %308 : vector<16x1xf32>
    %310 = vector.broadcast %302 : vector<16x1xf32> to vector<16x32xf32>
    %311 = arith.subf %294, %310 : vector<16x32xf32>
    %cst_146 = arith.constant 9.99999974E-6 : f32
    %312 = vector.broadcast %cst_146 : f32 to vector<16x1xf32>
    %313 = arith.addf %309, %312 : vector<16x1xf32>
    %314 = math.sqrt %313 : vector<16x1xf32>
    %315 = vector.broadcast %314 : vector<16x1xf32> to vector<16x32xf32>
    %316 = arith.divf %311, %315 : vector<16x32xf32>
    %317 = vector.broadcast %296 : vector<1x32xf32> to vector<16x32xf32>
    %318 = arith.mulf %316, %317 : vector<16x32xf32>
    %319 = vector.broadcast %298 : vector<1x32xf32> to vector<16x32xf32>
    %320 = arith.addf %318, %319 : vector<16x32xf32>
    %c1_147 = arith.constant 1 : index
    %c0_148 = arith.constant 0 : index
    %c0_149 = arith.constant 0 : index
    %321 = vector.load %arg8[%c1_147, %c0_148, %c0_149] : memref<2x32x128xf32, #tpu.memory_space<vmem>>, vector<1x32x128xf32>
    %322 = vector.shape_cast %321 : vector<1x32x128xf32> to vector<32x128xf32>
    %cst_150 = arith.constant dense<0.000000e+00> : vector<16x128xf32>
    %323 = tpu.matmul %320, %322, %cst_150 {dimension_numbers = #tpu.dot_dimension_numbers<[1], [0], [0], [1], [0, 0, 1, 1], [], []>} : vector<16x32xf32>, vector<32x128xf32>, vector<16x128xf32> -> vector<16x128xf32>
    %c1_151 = arith.constant 1 : index
    %c0_152 = arith.constant 0 : index
    %c0_153 = arith.constant 0 : index
    %324 = vector.load %arg9[%c1_151, %c0_152, %c0_153] : memref<2x1x128xf32, #tpu.memory_space<vmem>>, vector<1x1x128xf32>
    %325 = vector.shape_cast %324 : vector<1x1x128xf32> to vector<1x128xf32>
    %326 = vector.broadcast %325 : vector<1x128xf32> to vector<16x128xf32>
    %327 = arith.addf %323, %326 : vector<16x128xf32>
    %cst_154 = arith.constant 5.000000e-01 : f32
    %328 = vector.broadcast %cst_154 : f32 to vector<16x128xf32>
    %329 = arith.mulf %328, %327 : vector<16x128xf32>
    %cst_155 = arith.constant 0.636619746 : f32
    %330 = math.sqrt %cst_155 : f32
    %331 = arith.mulf %327, %327 : vector<16x128xf32>
    %332 = arith.mulf %327, %331 : vector<16x128xf32>
    %cst_156 = arith.constant 4.471500e-02 : f32
    %333 = vector.broadcast %cst_156 : f32 to vector<16x128xf32>
    %334 = arith.mulf %333, %332 : vector<16x128xf32>
    %335 = arith.addf %327, %334 : vector<16x128xf32>
    %336 = vector.broadcast %330 : f32 to vector<16x128xf32>
    %337 = arith.mulf %336, %335 : vector<16x128xf32>
    %338 = math.tanh %337 : vector<16x128xf32>
    %cst_157 = arith.constant 1.000000e+00 : f32
    %339 = vector.broadcast %cst_157 : f32 to vector<16x128xf32>
    %340 = arith.addf %339, %338 : vector<16x128xf32>
    %341 = arith.mulf %329, %340 : vector<16x128xf32>
    %c1_158 = arith.constant 1 : index
    %c0_159 = arith.constant 0 : index
    %c0_160 = arith.constant 0 : index
    %342 = vector.load %arg10[%c1_158, %c0_159, %c0_160] : memref<2x128x32xf32, #tpu.memory_space<vmem>>, vector<1x128x32xf32>
    %343 = vector.shape_cast %342 : vector<1x128x32xf32> to vector<128x32xf32>
    %cst_161 = arith.constant dense<0.000000e+00> : vector<16x32xf32>
    %344 = tpu.matmul %341, %343, %cst_161 {dimension_numbers = #tpu.dot_dimension_numbers<[1], [0], [0], [1], [0, 0, 1, 1], [], []>} : vector<16x128xf32>, vector<128x32xf32>, vector<16x32xf32> -> vector<16x32xf32>
    %345 = arith.addf %294, %344 : vector<16x32xf32>
    %c1_162 = arith.constant 1 : index
    %c0_163 = arith.constant 0 : index
    %c0_164 = arith.constant 0 : index
    %346 = vector.load %arg11[%c1_162, %c0_163, %c0_164] : memref<2x1x32xf32, #tpu.memory_space<vmem>>, vector<1x1x32xf32>
    %347 = vector.shape_cast %346 : vector<1x1x32xf32> to vector<1x32xf32>
    %348 = vector.broadcast %347 : vector<1x32xf32> to vector<16x32xf32>
    %349 = arith.addf %345, %348 : vector<16x32xf32>
    %c0_165 = arith.constant 0 : index
    %c0_166 = arith.constant 0 : index
    %350 = vector.load %arg12[%c0_165, %c0_166] : memref<1x32xf32, #tpu.memory_space<vmem>>, vector<1x32xf32>
    %c0_167 = arith.constant 0 : index
    %c0_168 = arith.constant 0 : index
    %351 = vector.load %arg13[%c0_167, %c0_168] : memref<1x32xf32, #tpu.memory_space<vmem>>, vector<1x32xf32>
    %cst_169 = arith.constant dense<0.000000e+00> : vector<16xf32>
    %352 = vector.multi_reduction <add>, %349, %cst_169 [1] : vector<16x32xf32> to vector<16xf32>
    %353 = vector.shape_cast %352 : vector<16xf32> to vector<16x1xf32>
    %cst_170 = arith.constant 3.200000e+01 : f32
    %354 = vector.broadcast %cst_170 : f32 to vector<16x1xf32>
    %355 = arith.divf %353, %354 : vector<16x1xf32>
    %356 = vector.broadcast %355 : vector<16x1xf32> to vector<16x32xf32>
    %357 = arith.subf %349, %356 : vector<16x32xf32>
    %358 = arith.mulf %357, %357 : vector<16x32xf32>
    %cst_171 = arith.constant dense<0.000000e+00> : vector<16xf32>
    %359 = vector.multi_reduction <add>, %358, %cst_171 [1] : vector<16x32xf32> to vector<16xf32>
    %360 = vector.shape_cast %359 : vector<16xf32> to vector<16x1xf32>
    %cst_172 = arith.constant 3.200000e+01 : f32
    %361 = vector.broadcast %cst_172 : f32 to vector<16x1xf32>
    %362 = arith.divf %360, %361 : vector<16x1xf32>
    %363 = vector.broadcast %355 : vector<16x1xf32> to vector<16x32xf32>
    %364 = arith.subf %349, %363 : vector<16x32xf32>
    %cst_173 = arith.constant 9.99999974E-6 : f32
    %365 = vector.broadcast %cst_173 : f32 to vector<16x1xf32>
    %366 = arith.addf %362, %365 : vector<16x1xf32>
    %367 = math.sqrt %366 : vector<16x1xf32>
    %368 = vector.broadcast %367 : vector<16x1xf32> to vector<16x32xf32>
    %369 = arith.divf %364, %368 : vector<16x32xf32>
    %370 = vector.broadcast %350 : vector<1x32xf32> to vector<16x32xf32>
    %371 = arith.mulf %369, %370 : vector<16x32xf32>
    %372 = vector.broadcast %351 : vector<1x32xf32> to vector<16x32xf32>
    %373 = arith.addf %371, %372 : vector<16x32xf32>
    %c0_174 = arith.constant 0 : index
    %c0_175 = arith.constant 0 : index
    %374 = vector.load %arg14[%c0_174, %c0_175] : memref<32x128xf32, #tpu.memory_space<vmem>>, vector<32x128xf32>
    %cst_176 = arith.constant dense<0.000000e+00> : vector<16x128xf32>
    %375 = tpu.matmul %373, %374, %cst_176 {dimension_numbers = #tpu.dot_dimension_numbers<[1], [0], [0], [1], [0, 0, 1, 1], [], []>} : vector<16x32xf32>, vector<32x128xf32>, vector<16x128xf32> -> vector<16x128xf32>
    %c0_177 = arith.constant 0 : index
    %c0_178 = arith.constant 0 : index
    %376 = vector.load %arg15[%c0_177, %c0_178] : memref<16x128xf32, #tpu.memory_space<vmem>>, vector<16x128xf32>
    tpu.vector_store %arg15[%c0_177, %c0_178], %375 {strides = array<i32>} : memref<16x128xf32, #tpu.memory_space<vmem>>, vector<16x128xf32>,
    return
  }
}

</mosaic_0001>

<bundles_post_ra>
// kernel: tpu_custom_call.1
= control target key start
LH: loop header
LB: loop body
LE: loop exit
PB: predicated region body
PF: predicated region fallthrough
CT: control target
= control target key end

     0   :  { %vm61_vm0 = vcmask 261120   ;;  %s5999_s0 = inlined_call_operand.vmem [shape: f32[16,32], index: 0, kind: input, shape index: {}]   ;;  %s6000_s1 = inlined_call_operand.vmem [shape: f32[2,1,32], index: 1, kind: input, shape index: {}]   ;;  %s6001_s2 = inlined_call_operand.vmem [shape: f32[2,1,32], index: 2, kind: input, shape index: {}]   ;;  %s6002_s3 = inlined_call_operand.vmem [shape: f32[2,32,96], index: 3, kind: input, shape index: {}]   ;;  %s6003_s4 = inlined_call_operand.vmem [shape: f32[2,4,8,32], index: 4, kind: input, shape index: {}]   ;;  %s6004_s5 = inlined_call_operand.vmem [shape: f32[2,1,32], index: 5, kind: input, shape index: {}]   ;;  %s6005_s6 = inlined_call_operand.vmem [shape: f32[2,1,32], index: 6, kind: input, shape index: {}]   ;;  %s6006_s7 = inlined_call_operand.vmem [shape: f32[2,1,32], index: 7, kind: input, shape index: {}]   ;;  %s6007_s8 = inlined_call_operand.vmem [shape: f32[2,32,128], index: 8, kind: input, shape index: {}]   ;;  %s6008_s9 = inlined_call_operand.vmem [shape: f32[2,1,128], index: 9, kind: input, shape index: {}]   ;;  %s6009_s10 = inlined_call_operand.vmem [shape: f32[2,128,32], index: 10, kind: input, shape index: {}]   ;;  %s6010_s11 = inlined_call_operand.vmem [shape: f32[2,1,32], index: 11, kind: input, shape index: {}]   ;;  %s6011_s12 = inlined_call_operand.vmem [shape: f32[1,32], index: 12, kind: input, shape index: {}]   ;;  %s6012_s13 = inlined_call_operand.vmem [shape: f32[1,32], index: 13, kind: input, shape index: {}]   ;;  %s6013_s14 = inlined_call_operand.vmem [shape: f32[32,128], index: 14, kind: input, shape index: {}]   ;;  %s6014_s15 = inlined_call_operand.hbm [shape: f32[16,128], index: 15, kind: output, shape index: {}]  }
   0x1   :  { %v5364_v0 = vld [vmem:[%s5999_s0] sm:$0xff]  ;;  %v5369_v1 = vld [vmem:[%s5999_s0 + $0x8] sm:$0xff] }
   0x2   :  { %20 = vsyncpa [#allocation3], 0  ;;  %v62_v2 = vsel %vm61_vm0, %v5364_v0, 0.0  ;;  %v65_v3 = vsel %vm61_vm0, %v5369_v1, 0.0  ;;  %v119_v14 = vld [vmem:[%s6002_s3] sm:$0xff]  ;;  %v120_v15 = vld [vmem:[%s6002_s3 + $0x8] sm:$0xff]  ;;  %v53_v51 = vlaneseq }
   0x3   :  { %63 = vadd.xlane.f32.xlu0 %v62_v2  ;;  %v121_v16 = vld [vmem:[%s6002_s3 + $0x10] sm:$0xff]  ;;  %v4995_v17 = vpack.c.bf16 %v120_v15, %v119_v14  ;;  %v122_v18 = vld [vmem:[%s6002_s3 + $0x18] sm:$0xff]  ;;  %v4388_v37 = vld [vmem:[%s6000_s1] ss:$0 sm:$0xff]  ;;  %v5264_v46 = vmov 0.0   ;;  %vm5265_vm5 = vmmov 0  }
   0x4   :  { %v4999_v19 = vpack.c.bf16 %v122_v18, %v121_v16  ;;  %v4389_v39 = vld [vmem:[%s6001_s2] ss:$0 sm:$0xff]  ;;  %4701 = vmatprep.subr.mxu0 %v5264_v46  ;;  %4703 = vmatprep.mubr.msk.f32.mxu0 %vm5265_vm5, %v5264_v46  ;;  %s5266_s18 = smov 96   ;;  %vm207_vm6 = vcmask 64512   ;;  %v54_v52 = vshrl.u32 %v53_v51, 7  ;;  %v56_v53 = vand.u32 127, %v53_v51 }
   0x5   :  { %4996 = vmatprep.subr.bf16.mxu1 %v4995_v17  ;;  %v5267_v54 = vmov -1e+30   ;;  %s5268_s19 = smov 64   ;;  %s5269_s20 = smov 88  }
   0x6   :  { %4998 = vmatpush3.bf16.msra.mxu1 %v4995_v17  ;;  %vm57_vm7 = vcmp.le.s32.totalorder %v56_v53, %v54_v52  ;;  %s5270_s21 = smov 120   ;;  %s5271_s0 = smov 80  }
   0x7   :  { %66 = vadd.xlane.f32.xlu0 %v65_v3  ;;  %5000 = vmatprep.subr.bf16.mxu1 %v4999_v19  ;;  %v5425_v55 = vsel %vm57_vm7, 0.0, %v5267_v54  ;;  %s5272_s22 = smov 56   ;;  %s6023_s23 = smov 112  }
   0x8   :  { %s6021_s24 = smov 48   ;;  %s6019_s25 = smov 72  }
   0x9   :  { %s6017_s26 = smov 104   ;;  %s6015_s27 = smov 40  }
   0xa   :  { %5002 = vmatpush3.bf16.msra.mxu1 %v4999_v19 }
   0xb   :  { %4681 = vmatprep.subr.mxu1 %v5264_v46 }
  0x90   :  { %v64_v4 = vpop.xlane.xlu0 %63 }
  0x91   :  { %v69_v5 = vmul.f32 0.03125, %v64_v4 }
  0x93   :  { %v71_v6 = vsub.f32 %v5364_v0, %v69_v5 }
  0x94   :  { %v67_v7 = vpop.xlane.xlu0 %66 }
  0x95   :  { %v70_v8 = vmul.f32 0.03125, %v67_v7  ;;  %v73_v9 = vmul.f32 %v71_v6, %v71_v6 }
  0x97   :  { %v72_v10 = vsub.f32 %v5369_v1, %v70_v8  ;;  %v75_v11 = vsel %vm61_vm0, %v73_v9, 0.0 }
  0x98   :  { %76 = vadd.xlane.f32.xlu1 %v75_v11 }
  0x99   :  { %v74_v12 = vmul.f32 %v72_v10, %v72_v10 }
  0x9b   :  { %v78_v13 = vsel %vm61_vm0, %v74_v12, 0.0 }
  0x9c   :  { %79 = vadd.xlane.f32.xlu1 %v78_v13 }
 0x125   :  { %v77_v20 = vpop.xlane.xlu1 %76 }
 0x126   :  { %v81_v21 = vmul.f32 0.03125, %v77_v20 }
 0x128   :  { %v83_v22 = vadd.f32 1e-05, %v81_v21 }
 0x129   :  { %v80_v23 = vpop.xlane.xlu1 %79 }
 0x12a   :  { %5128 = vrsqrt.f32 %v83_v22  ;;  %v82_v24 = vmul.f32 0.03125, %v80_v23  ;;  %vm87_vm1 = vcmp.eq.f32.partialorder %v83_v22, inf  ;;  %v90_v28 = vand.u32 2147483648, %v83_v22 }
 0x12b   :  { %vm89_vm2 = vcmp.eq.f32.partialorder %v83_v22, 0.0 }
 0x12c   :  { %v84_v25 = vadd.f32 1e-05, %v82_v24 }
 0x12e   :  { %5130 = vrsqrt.f32 %v84_v25  ;;  %vm94_vm3 = vcmp.eq.f32.partialorder %v84_v25, inf  ;;  %v97_v33 = vand.u32 2147483648, %v84_v25  ;;  %vm96_vm4 = vcmp.eq.f32.partialorder %v84_v25, 0.0 }
 0x134   :  { %v5129_v26 = vpop.eup %5128 }
 0x135   :  { %v86_v27 = vmul.f32 %v5129_v26, %v83_v22 }
 0x137   :  { %v88_v29 = vsel %vm87_vm1, %v83_v22, %v86_v27 }
 0x138   :  { %v5131_v30 = vpop.eup %5130  ;;  %v91_v31 = vsel %vm89_vm2, %v90_v28, %v88_v29 }
 0x139   :  { %v93_v32 = vmul.f32 %v5131_v30, %v84_v25  ;;  %5132 = vrcp.f32 %v91_v31 }
 0x13b   :  { %v95_v34 = vsel %vm94_vm3, %v84_v25, %v93_v32 }
 0x13c   :  { %v98_v35 = vsel %vm96_vm4, %v97_v33, %v95_v34 }
 0x13d   :  { %5134 = vrcp.f32 %v98_v35 }
 0x143   :  { %v5133_v36 = vpop.eup %5132 }
 0x144   :  { %v100_v38 = vmul.f32 %v5133_v36, %v71_v6 }
 0x146   :  { %v109_v40 = vmul.f32 %v4388_v37, %v100_v38 }
 0x147   :  { %v5135_v41 = vpop.eup %5134 }
 0x148   :  { %v102_v42 = vmul.f32 %v5135_v41, %v72_v10  ;;  %v117_v43 = vadd.f32 %v4389_v39, %v109_v40 }
 0x14a   :  { %v110_v44 = vmul.f32 %v4388_v37, %v102_v42  ;;  %4678 = vmatprep.mubr.msk.f32.mxu1 %vm61_vm0, %v117_v43 }
 0x14c   :  { %v118_v45 = vadd.f32 %v4389_v39, %v110_v44 }
 0x14e   :  { %4679 = vmatmul.mubr.msk.f32.vlgmr.msra.gmra.mrb[0].mxu1 %vm61_vm0, %v118_v45 }
 0x14f   :  { %4683 = vmatprep.mubr.msk.f32.mxu1 %vm5265_vm5, %v5264_v46 }
 0x221   :  { %v5405_v47 = vpop.f32.mrb[0].mxu1 }
 0x222   :  { %283 = vrot.lane.b32.xlu1 %v5405_v47, %s5266_s18  ;;  %v5409_v48 = vpop.f32.mrb[1].mxu1 }
 0x223   :  { %205 = vrot.lane.b32.xlu0 %v5409_v48, %s5266_s18 }
 0x294   :  { %v284_v50 = vpop.permute.xlu1 %283 }
 0x295   :  { %v206_v49 = vpop.permute.xlu0 %205 }
 0x296   :  { %4682 = vmatpush3.xpose.msk.msra.mxu1 %vm207_vm6, %v206_v49 }
 0x297   :  { %4686 = vmatprep.subr.mxu1 %v5264_v46 }
 0x299   :  { %4684 = vmatmul.mubr.msk.f32.vlgmr.msra.gmra.mrb[2].mxu1 %vm207_vm6, %v5409_v48 }
 0x29a   :  { %4687 = vmatpush3.xpose.msk.msra.mxu1 %vm207_vm6, %v284_v50  ;;  %4688 = vmatprep.mubr.msk.f32.mxu1 %vm5265_vm5, %v5264_v46 }
 0x29b   :  { %4691 = vmatprep.subr.mxu1 %v5264_v46 }
 0x29d   :  { %4689 = vmatmul.mubr.msk.f32.vlgmr.msra.gmra.mrb[4].mxu1 %vm207_vm6, %v5405_v47 }
 0x29e   :  { %4693 = vmatprep.mubr.msk.f32.mxu1 %vm5265_vm5, %v5264_v46 }
 0x36c   :  { %v278_v56 = vpop.f32.mrb[2].mxu1 }
 0x36d   :  { %v279_v57 = vadd.f32 %v278_v56, %v5425_v55  ;;  %v4685_v58 = vpop.f32.mrb[3].mxu1 }
 0x36f   :  { %v359_v59 = vsel %vm207_vm6, %v279_v57, -inf }
 0x370   :  { %360 = vmax.xlane.f32.xlu1 %v359_v59  ;;  %v355_v60 = vpop.f32.mrb[4].mxu1 }
 0x371   :  { %v356_v61 = vadd.f32 %v355_v60, %v5425_v55  ;;  %v4690_v62 = vpop.f32.mrb[5].mxu1 }
 0x373   :  { %v362_v63 = vsel %vm207_vm6, %v356_v61, -inf }
 0x374   :  { %363 = vmax.xlane.f32.xlu0 %v362_v63 }
 0x381   :  { %457 = vrot.lane.b32.xlu1 %v5405_v47, %s5268_s19 }
 0x385   :  { %614 = vrot.lane.b32.xlu1 %v5405_v47, %s5269_s20 }
 0x3fd   :  { %v361_v2 = vpop.xlane.xlu1 %360 }
 0x3fe   :  { %v365_v3 = vsub.f32 %v279_v57, %v361_v2 }
 0x400   :  { %v367_v4 = vmul.f32 1.442695, %v365_v3 }
 0x401   :  { %v364_v5 = vpop.xlane.xlu0 %363  ;;  %v458_v12 = vpop.permute.xlu1 %457 }
 0x402   :  { %5136 = vpow2.f32 %v367_v4  ;;  %v366_v6 = vsub.f32 %v356_v61, %v364_v5 }
 0x404   :  { %v369_v7 = vmul.f32 1.442695, %v366_v6 }
 0x405   :  { %v615_v13 = vpop.permute.xlu1 %614 }
 0x406   :  { %5138 = vpow2.f32 %v369_v7 }
 0x40c   :  { %v5137_v8 = vpop.eup %5136 }
 0x40d   :  { %v371_v9 = vsel %vm207_vm6, %v5137_v8, 0.0 }
 0x40e   :  { %372 = vadd.xlane.f32.xlu0 %v371_v9 }
 0x410   :  { %v5139_v10 = vpop.eup %5138 }
 0x411   :  { %v374_v11 = vsel %vm207_vm6, %v5139_v10, 0.0 }
 0x412   :  { %375 = vadd.xlane.f32.xlu1 %v374_v11  ;;  %v4404_v11 = vld [vmem:[%s6003_s4 + $0x8] sm:$0xff] }
 0x423   :  { %612 = vrot.lane.b32.xlu1 %v5405_v47, %s5270_s21 }
 0x424   :  { %381 = vrot.lane.b32.xlu0 %v5409_v48, %s5268_s19 }
 0x427   :  { %534 = vrot.lane.b32.xlu1 %v5409_v48, %s5270_s21 }
 0x428   :  { %536 = vrot.lane.b32.xlu0 %v5409_v48, %s5269_s20 }
 0x42b   :  { %1030 = vrot.lane.b32.xlu1 %v5409_v48, %s5271_s0 }
 0x49b   :  { %v373_v14 = vpop.xlane.xlu0 %372 }
 0x49c   :  { %5140 = vrcp.f32 %v373_v14 }
 0x49f   :  { %v376_v15 = vpop.xlane.xlu1 %375  ;;  %v382_v16 = vpop.permute.xlu0 %381 }
 0x4a0   :  { %5142 = vrcp.f32 %v376_v15  ;;  %4692 = vmatpush3.msra.mxu1 %v382_v16 }
 0x4a1   :  { %4696 = vmatprep.subr.mxu1 %v5264_v46 }
 0x4a3   :  { %v613_v17 = vpop.permute.xlu1 %612  ;;  %v537_v18 = vpop.permute.xlu0 %536 }
 0x4a4   :  { %4702 = vmatpush3.xpose.msk.msra.mxu0 %vm207_vm6, %v537_v18 }
 0x4a5   :  { %4711 = vmatprep.subr.mxu0 %v5264_v46 }
 0x4a6   :  { %v5141_v19 = vpop.eup %5140 }
 0x4a7   :  { %v379_v20 = vmul.f32 %v5141_v19, %v5137_v8  ;;  %v535_v21 = vpop.permute.xlu1 %534 }
 0x4a8   :  { %4704 = vmatmul.mubr.msk.f32.vlgmr.msra.gmra.mrb[0].mxu0 %vm207_vm6, %v535_v21 }
 0x4a9   :  { %4694 = vmatmul.mubr.msk.f32.vlgmr.msra.gmra.mrb[6].mxu1 %vm207_vm6, %v379_v20  ;;  %4713 = vmatprep.mubr.msk.f32.mxu0 %vm5265_vm5, %v5264_v46 }
 0x4aa   :  { %v5143_v22 = vpop.eup %5142  ;;  %4697 = vmatpush3.msra.mxu1 %v458_v12  ;;  %4698 = vmatprep.mubr.msk.f32.mxu1 %vm5265_vm5, %v5264_v46  ;;  %v533_v12 = vld [vmem:[%s6003_s4] sm:$0xff] }
 0x4ab   :  { %v380_v23 = vmul.f32 %v5143_v22, %v5139_v10  ;;  %4706 = vmatprep.subr.mxu1 %v5264_v46  ;;  %v1031_v42 = vpop.permute.xlu1 %1030 }
 0x4ad   :  { %4699 = vmatmul.mubr.msk.f32.vlgmr.msra.gmra.mrb[8].mxu1 %vm207_vm6, %v380_v23 }
 0x4ae   :  { %4708 = vmatprep.mubr.msk.f32.mxu1 %vm5265_vm5, %v5264_v46 }
 0x4b1   :  { %4707 = vmatpush3.xpose.msk.msra.mxu1 %vm207_vm6, %v615_v13 }
 0x4b2   :  { %4716 = vmatprep.subr.mxu1 %v5264_v46 }
 0x4b4   :  { %4709 = vmatmul.mubr.msk.f32.vlgmr.msra.gmra.mrb[10].mxu1 %vm207_vm6, %v613_v17 }
 0x4b5   :  { %4718 = vmatprep.mubr.msk.f32.mxu1 %vm5265_vm5, %v5264_v46 }
 0x57b   :  { %v608_v24 = vpop.f32.mrb[0].mxu0 }
 0x57c   :  { %v5465_v25 = vpop.f32.mrb[6].mxu1  ;;  %v4705_v26 = vpop.f32.mrb[1].mxu0  ;;  %v609_v40 = vadd.f32 %v608_v24, %v5425_v55 }
 0x57d   :  { %v4695_v27 = vpop.f32.mrb[7].mxu1 }
 0x57e   :  { %v690_v41 = vsel %vm207_vm6, %v609_v40, -inf }
 0x580   :  { %v5467_v28 = vpop.f32.mrb[8].mxu1 }
 0x581   :  { %v4700_v29 = vpop.f32.mrb[9].mxu1 }
 0x582   :  { %v4415_v29 = vld [vmem:[%s6003_s4 + $0x10] sm:$0xff] }
 0x587   :  { %v686_v30 = vpop.f32.mrb[10].mxu1 }
 0x588   :  { %v687_v31 = vadd.f32 %v686_v30, %v5425_v55  ;;  %v4710_v32 = vpop.f32.mrb[11].mxu1 }
 0x58a   :  { %v693_v33 = vsel %vm207_vm6, %v687_v31, -inf }
 0x58b   :  { %694 = vmax.xlane.f32.xlu0 %v693_v33 }
 0x5a1   :  { %788 = vrot.lane.b32.xlu0 %v5405_v47, %s5272_s22 }
 0x5a5   :  { %1028 = vrot.lane.b32.xlu0 %v5409_v48, %s6023_s23 }
 0x5a9   :  { %1106 = vrot.lane.b32.xlu0 %v5405_v47, %s6023_s23  ;;  %s6029_s23 = smov 40  }
 0x618   :  { %v695_v34 = vpop.xlane.xlu0 %694 }
 0x619   :  { %v697_v35 = vsub.f32 %v687_v31, %v695_v34 }
 0x61b   :  { %v700_v36 = vmul.f32 1.442695, %v697_v35 }
 0x61c   :  { %v789_v37 = vpop.permute.xlu0 %788 }
 0x61d   :  { %5144 = vpow2.f32 %v700_v36  ;;  %4717 = vmatpush3.msra.mxu1 %v789_v37 }
 0x61e   :  { %4731 = vmatprep.subr.mxu1 %v5264_v46 }
 0x620   :  { %v1029_v49 = vpop.permute.xlu0 %1028 }
 0x624   :  { %v1107_v51 = vpop.permute.xlu0 %1106 }
 0x627   :  { %v5145_v38 = vpop.eup %5144 }
 0x628   :  { %v705_v39 = vsel %vm207_vm6, %v5145_v38, 0.0 }
 0x629   :  { %706 = vadd.xlane.f32.xlu1 %v705_v39 }
 0x63a   :  { %1108 = vrot.lane.b32.xlu1 %v5405_v47, %s5271_s0 }
 0x65e   :  { %691 = vmax.xlane.f32.xlu1 %v690_v41 }
 0x6b6   :  { %v707_v43 = vpop.xlane.xlu1 %706 }
 0x6b7   :  { %5146 = vrcp.f32 %v707_v43 }
 0x6ba   :  { %v1109_v50 = vpop.permute.xlu1 %1108 }
 0x6c1   :  { %v5147_v44 = vpop.eup %5146 }
 0x6c2   :  { %v711_v45 = vmul.f32 %v5147_v44, %v5145_v38 }
 0x6c4   :  { %4719 = vmatmul.mubr.msk.f32.vlgmr.msra.gmra.mrb[12].mxu1 %vm207_vm6, %v711_v45 }
 0x6c5   :  { %4732 = vmatpush3.xpose.msk.msra.mxu1 %vm207_vm6, %v1031_v42  ;;  %4733 = vmatprep.mubr.msk.f32.mxu1 %vm5265_vm5, %v5264_v46 }
 0x6c6   :  { %4736 = vmatprep.subr.mxu1 %v5264_v46 }
 0x6c8   :  { %4734 = vmatmul.mubr.msk.f32.vlgmr.msra.gmra.mrb[14].mxu1 %vm207_vm6, %v1029_v49 }
 0x6c9   :  { %4737 = vmatpush3.xpose.msk.msra.mxu1 %vm207_vm6, %v1109_v50  ;;  %4738 = vmatprep.mubr.msk.f32.mxu1 %vm5265_vm5, %v5264_v46 }
 0x6ca   :  { %4746 = vmatprep.subr.mxu1 %v5264_v46 }
 0x6cc   :  { %4739 = vmatmul.mubr.msk.f32.vlgmr.msra.gmra.mrb[16].mxu1 %vm207_vm6, %v1107_v51 }
 0x6cd   :  { %4748 = vmatprep.mubr.msk.f32.mxu1 %vm5265_vm5, %v5264_v46 }
 0x6eb   :  { %v692_v52 = vpop.xlane.xlu1 %691 }
 0x6ec   :  { %v696_v53 = vsub.f32 %v609_v40, %v692_v52 }
 0x6ee   :  { %v698_v54 = vmul.f32 1.442695, %v696_v53 }
 0x6f0   :  { %5148 = vpow2.f32 %v698_v54 }
 0x6fa   :  { %v5149_v56 = vpop.eup %5148 }
 0x6fb   :  { %v702_v57 = vsel %vm207_vm6, %v5149_v56, 0.0 }
 0x6fc   :  { %703 = vadd.xlane.f32.xlu0 %v702_v57 }
 0x712   :  { %712 = vrot.lane.b32.xlu0 %v5409_v48, %s5272_s22 }
 0x716   :  { %1282 = vrot.lane.b32.xlu0 %v5405_v47, %s6021_s24 }
 0x71a   :  { %1445 = vrot.lane.b32.xlu0 %v5409_v48, %s6019_s25 }
 0x71e   :  { %1523 = vrot.lane.b32.xlu0 %v5405_v47, %s6019_s25 }
 0x722   :  { %1443 = vrot.lane.b32.xlu0 %v5409_v48, %s6017_s26 }
 0x789   :  { %v704_v58 = vpop.xlane.xlu0 %703 }
 0x78a   :  { %5150 = vrcp.f32 %v704_v58 }
 0x78d   :  { %v713_v59 = vpop.permute.xlu0 %712 }
 0x78e   :  { %4712 = vmatpush3.msra.mxu0 %v713_v59 }
 0x78f   :  { %4721 = vmatprep.subr.mxu0 %v4404_v11 }
 0x791   :  { %v1283_v60 = vpop.permute.xlu0 %1282 }
 0x792   :  { %4747 = vmatpush3.msra.mxu1 %v1283_v60 }
 0x793   :  { %4756 = vmatprep.subr.mxu1 %v5264_v46 }
 0x794   :  { %v5151_v61 = vpop.eup %5150 }
 0x795   :  { %v710_v62 = vmul.f32 %v5151_v61, %v5149_v56  ;;  %v1446_v31 = vpop.permute.xlu0 %1445 }
 0x797   :  { %4714 = vmatmul.mubr.msk.f32.vlgmr.msra.gmra.mrb[2].mxu0 %vm207_vm6, %v710_v62  ;;  %v860_v63 = vpop.f32.mrb[12].mxu1 }
 0x798   :  { %v4720_v2 = vpop.f32.mrb[13].mxu1  ;;  %4722 = vmatpush3.msra.mxu0 %v4404_v11 }
 0x799   :  { %4726 = vmatprep.subr.mxu0 %v533_v12  ;;  %v1524_v33 = vpop.permute.xlu0 %1523 }
 0x79b   :  { %v1102_v3 = vpop.f32.mrb[14].mxu1 }
 0x79c   :  { %v1103_v4 = vadd.f32 %v1102_v3, %v5425_v55  ;;  %v4735_v5 = vpop.f32.mrb[15].mxu1 }
 0x79d   :  { %v1444_v35 = vpop.permute.xlu0 %1443 }
 0x79e   :  { %v1184_v6 = vsel %vm207_vm6, %v1103_v4, -inf }
 0x79f   :  { %1185 = vmax.xlane.f32.xlu1 %v1184_v6  ;;  %v1180_v7 = vpop.f32.mrb[16].mxu1 }
 0x7a0   :  { %v1181_v8 = vadd.f32 %v1180_v7, %v5425_v55  ;;  %v4740_v9 = vpop.f32.mrb[17].mxu1 }
 0x7a2   :  { %v1187_v10 = vsel %vm207_vm6, %v1181_v8, -inf }
 0x7a3   :  { %1188 = vmax.xlane.f32.xlu1 %v1187_v10 }
 0x82c   :  { %v1186_v13 = vpop.xlane.xlu1 %1185 }
 0x82d   :  { %v1190_v14 = vsub.f32 %v1103_v4, %v1186_v13  ;;  %v4427_v13 = vld [vmem:[%s6004_s5] ss:$0 sm:$0xff] }
 0x82f   :  { %v1192_v15 = vmul.f32 1.442695, %v1190_v14 }
 0x830   :  { %v1189_v16 = vpop.xlane.xlu1 %1188 }
 0x831   :  { %5152 = vpow2.f32 %v1192_v15  ;;  %v1191_v17 = vsub.f32 %v1181_v8, %v1189_v16  ;;  %v4424_v8 = vld [vmem:[%s6003_s4 + $0x18] sm:$0xff] }
 0x833   :  { %v1194_v18 = vmul.f32 1.442695, %v1191_v17 }
 0x835   :  { %5154 = vpow2.f32 %v1194_v18 }
 0x83b   :  { %v5153_v19 = vpop.eup %5152 }
 0x83c   :  { %v1196_v20 = vsel %vm207_vm6, %v5153_v19, 0.0 }
 0x83d   :  { %1197 = vadd.xlane.f32.xlu1 %v1196_v20 }
 0x83f   :  { %v5155_v21 = vpop.eup %5154 }
 0x840   :  { %v1199_v22 = vsel %vm207_vm6, %v5155_v21, 0.0 }
 0x841   :  { %1200 = vadd.xlane.f32.xlu1 %v1199_v22 }
 0x852   :  { %1206 = vrot.lane.b32.xlu1 %v5409_v48, %s6021_s24 }
 0x856   :  { %1521 = vrot.lane.b32.xlu1 %v5405_v47, %s6017_s26 }
 0x86a   :  { %v784_v23 = vpop.f32.mrb[2].mxu0 }
 0x86b   :  { %v4715_v24 = vpop.f32.mrb[3].mxu0  ;;  %4723 = vmatprep.mubr.msk.f32.mxu0 %vm207_vm6, %v784_v23 }
 0x86c   :  { %4724 = vmatmul.mubr.msk.f32.vlgmr.msra.gmra.mrb[4].mxu0 %vm207_vm6, %v860_v63 }
 0x86d   :  { %4728 = vmatprep.mubr.msk.f32.mxu0 %vm207_vm6, %v5465_v25  ;;  %4727 = vmatpush3.msra.mxu0 %v533_v12 }
 0x86e   :  { %4741 = vmatprep.subr.mxu0 %v5264_v46 }
 0x874   :  { %4729 = vmatmul.mubr.msk.f32.vlgmr.msra.gmra.mrb[4].mxu0 %vm207_vm6, %v5467_v28 }
 0x875   :  { %4743 = vmatprep.mubr.msk.f32.mxu0 %vm5265_vm5, %v5264_v46 }
 0x8ca   :  { %v1198_v26 = vpop.xlane.xlu1 %1197 }
 0x8cb   :  { %5156 = vrcp.f32 %v1198_v26 }
 0x8ce   :  { %v1201_v27 = vpop.xlane.xlu1 %1200 }
 0x8cf   :  { %5158 = vrcp.f32 %v1201_v27 }
 0x8d2   :  { %v1207_v30 = vpop.permute.xlu1 %1206 }
 0x8d3   :  { %4742 = vmatpush3.msra.mxu0 %v1207_v30 }
 0x8d4   :  { %4751 = vmatprep.subr.mxu0 %v4415_v29 }
 0x8d5   :  { %v5157_v25 = vpop.eup %5156 }
 0x8d6   :  { %v1204_v32 = vmul.f32 %v5157_v25, %v5153_v19  ;;  %v1522_v40 = vpop.permute.xlu1 %1521  ;;  %v1928_v25 = vld [vmem:[%s6007_s8 + $0x8] sm:$0xff] }
 0x8d8   :  { %4744 = vmatmul.mubr.msk.f32.vlgmr.msra.gmra.mrb[6].mxu0 %vm207_vm6, %v1204_v32  ;;  %v1929_v32 = vld [vmem:[%s6007_s8 + $0x10] sm:$0xff] }
 0x8d9   :  { %v5159_v28 = vpop.eup %5158  ;;  %4752 = vmatpush3.msra.mxu0 %v4415_v29 }
 0x8da   :  { %v1205_v34 = vmul.f32 %v5159_v28, %v5155_v21  ;;  %4761 = vmatprep.subr.mxu0 %v5264_v46 }
 0x8dc   :  { %4749 = vmatmul.mubr.msk.f32.vlgmr.msra.gmra.mrb[18].mxu1 %vm207_vm6, %v1205_v34 }
 0x8dd   :  { %4757 = vmatpush3.xpose.msk.msra.mxu1 %vm207_vm6, %v1446_v31  ;;  %4758 = vmatprep.mubr.msk.f32.mxu1 %vm5265_vm5, %v5264_v46  ;;  %v1927_v31 = vld [vmem:[%s6007_s8] sm:$0xff] }
 0x8de   :  { %4766 = vmatprep.subr.mxu1 %v5264_v46  ;;  %v5003_v28 = vpack.c.bf16 %v1928_v25, %v1927_v31 }
 0x8e0   :  { %4759 = vmatmul.mubr.msk.f32.vlgmr.msra.gmra.mrb[20].mxu1 %vm207_vm6, %v1444_v35  ;;  %v2037_v35 = vld [vmem:[%s6009_s10] sm:$0xff] }
 0x8e1   :  { %4768 = vmatprep.mubr.msk.f32.mxu1 %vm5265_vm5, %v5264_v46 }
 0x9ab   :  { %v1278_v36 = vpop.f32.mrb[6].mxu0 }
 0x9ac   :  { %v4745_v37 = vpop.f32.mrb[7].mxu0  ;;  %4753 = vmatprep.mubr.msk.f32.mxu0 %vm207_vm6, %v1278_v36  ;;  %v2038_v36 = vld [vmem:[%s6009_s10 + $0x8] sm:$0xff] }
 0x9ad   :  { %v5011_v37 = vpack.c.bf16 %v2038_v36, %v2037_v35 }
 0x9af   :  { %v1354_v38 = vpop.f32.mrb[18].mxu1 }
 0x9b0   :  { %v4750_v39 = vpop.f32.mrb[19].mxu1  ;;  %4754 = vmatmul.mubr.msk.f32.vlgmr.msra.gmra.mrb[4].mxu0 %vm207_vm6, %v1354_v38 }
 0x9b1   :  { %4762 = vmatpush3.xpose.msk.msra.mxu0 %vm207_vm6, %v1524_v33  ;;  %4763 = vmatprep.mubr.msk.f32.mxu0 %vm5265_vm5, %v5264_v46  ;;  %v1930_v33 = vld [vmem:[%s6007_s8 + $0x18] sm:$0xff] }
 0x9b2   :  { %4771 = vmatprep.subr.mxu0 %v5264_v46  ;;  %v5007_v34 = vpack.c.bf16 %v1930_v33, %v1929_v32 }
 0x9b3   :  { %v1517_v41 = vpop.f32.mrb[20].mxu1 }
 0x9b4   :  { %v1518_v42 = vadd.f32 %v1517_v41, %v5425_v55  ;;  %v4760_v43 = vpop.f32.mrb[21].mxu1  ;;  %4764 = vmatmul.mubr.msk.f32.vlgmr.msra.gmra.mrb[8].mxu0 %vm207_vm6, %v1522_v40 }
 0x9b5   :  { %4773 = vmatprep.mubr.msk.f32.mxu0 %vm5265_vm5, %v5264_v46 }
 0x9b6   :  { %v1599_v44 = vsel %vm207_vm6, %v1518_v42, -inf }
 0x9b7   :  { %1600 = vmax.xlane.f32.xlu0 %v1599_v44 }
 0xa44   :  { %v1601_v45 = vpop.xlane.xlu0 %1600 }
 0xa45   :  { %v1605_v49 = vsub.f32 %v1518_v42, %v1601_v45 }
 0xa47   :  { %v1607_v50 = vmul.f32 1.442695, %v1605_v49 }
 0xa49   :  { %5160 = vpow2.f32 %v1607_v50 }
 0xa53   :  { %v5161_v51 = vpop.eup %5160 }
 0xa54   :  { %v1611_v52 = vsel %vm207_vm6, %v5161_v51, 0.0 }
 0xa55   :  { %1612 = vadd.xlane.f32.xlu0 %v1611_v52 }
 0xa87   :  { %v1595_v53 = vpop.f32.mrb[8].mxu0 }
 0xa88   :  { %v1596_v54 = vadd.f32 %v1595_v53, %v5425_v55  ;;  %v4765_v56 = vpop.f32.mrb[9].mxu0 }
 0xa8a   :  { %v1602_v57 = vsel %vm207_vm6, %v1596_v54, -inf }
 0xa8b   :  { %1603 = vmax.xlane.f32.xlu1 %v1602_v57 }
 0xa9c   :  { %1697 = vrot.lane.b32.xlu1 %v5405_v47, %s6015_s27 }
 0xae2   :  { %v1613_v2 = vpop.xlane.xlu0 %1612 }
 0xb18   :  { %v1604_v58 = vpop.xlane.xlu1 %1603 }
 0xb19   :  { %v1606_v59 = vsub.f32 %v1596_v54, %v1604_v58 }
 0xb1b   :  { %v1609_v60 = vmul.f32 1.442695, %v1606_v59  ;;  %v4428_v59 = vld [vmem:[%s6005_s6] ss:$0 sm:$0xff] }
 0xb1c   :  { %v1698_v61 = vpop.permute.xlu1 %1697 }
 0xb1d   :  { %5162 = vpow2.f32 %v1609_v60  ;;  %4772 = vmatpush3.msra.mxu0 %v1698_v61 }
 0xb1e   :  { %5164 = vrcp.f32 %v1613_v2  ;;  %4776 = vmatprep.subr.mxu0 %v4424_v8 }
 0xb27   :  { %v5163_v62 = vpop.eup %5162 }
 0xb28   :  { %v1614_v63 = vsel %vm207_vm6, %v5163_v62, 0.0  ;;  %v5165_v4 = vpop.eup %5164 }
 0xb29   :  { %1615 = vadd.xlane.f32.xlu0 %v1614_v63  ;;  %v1619_v5 = vmul.f32 %v5165_v4, %v5161_v51  ;;  %v4429_v63 = vld [vmem:[%s6006_s7] ss:$0 sm:$0xff] }
 0xb3f   :  { %1621 = vrot.lane.b32.xlu0 %v5409_v48, %s6015_s27 }
 0xbb6   :  { %v1616_v3 = vpop.xlane.xlu0 %1615 }
 0xbb7   :  { %5166 = vrcp.f32 %v1616_v3 }
 0xbba   :  { %v1622_v47 = vpop.permute.xlu0 %1621 }
 0xbbb   :  { %4767 = vmatpush3.msra.mxu1 %v1622_v47  ;;  %v2039_v47 = vld [vmem:[%s6009_s10 + $0x10] sm:$0xff] }
 0xbbc   :  { %4769 = vmatmul.mubr.msk.f32.vlgmr.msra.gmra.mrb[22].mxu1 %vm207_vm6, %v1619_v5  ;;  %5004 = vmatprep.subr.bf16.mxu1 %v5003_v28 }
 0xbbd   :  { %5006 = vmatpush3.bf16.msra.mxu1 %v5003_v28 }
 0xbbe   :  { %5008 = vmatprep.subr.bf16.mxu1 %v5007_v34 }
 0xbc1   :  { %v5167_v6 = vpop.eup %5166  ;;  %5010 = vmatpush3.bf16.msra.mxu1 %v5007_v34 }
 0xbc2   :  { %v1620_v7 = vmul.f32 %v5167_v6, %v5163_v62  ;;  %v2040_v6 = vld [vmem:[%s6009_s10 + $0x18] sm:$0xff] }
 0xbc4   :  { %4774 = vmatmul.mubr.msk.f32.vlgmr.msra.gmra.mrb[10].mxu0 %vm207_vm6, %v1620_v7  ;;  %v5015_v7 = vpack.c.bf16 %v2040_v6, %v2039_v47  ;;  %v4438_v6 = vld [vmem:[%s6002_s3 + $0x20] sm:$0xff] }
 0xbc5   :  { %4777 = vmatpush3.msra.mxu0 %v4424_v8  ;;  %v2041_v8 = vld [vmem:[%s6009_s10 + $0x20] sm:$0xff] }
 0xbc6   :  { %5012 = vmatprep.subr.bf16.mxu0 %v5011_v37 }
 0xc8f   :  { %v1693_v48 = vpop.f32.mrb[22].mxu1 }
 0xc90   :  { %v4770_v9 = vpop.f32.mrb[23].mxu1  ;;  %4778 = vmatprep.mubr.msk.f32.mxu0 %vm207_vm6, %v1693_v48  ;;  %v2042_v48 = vld [vmem:[%s6009_s10 + $0x28] sm:$0xff] }
 0xc91   :  { %v5019_v9 = vpack.c.bf16 %v2042_v48, %v2041_v8  ;;  %v4440_v8 = vld [vmem:[%s6002_s3 + $0x30] sm:$0xff] }
 0xc97   :  { %v1769_v10 = vpop.f32.mrb[10].mxu0 }
 0xc98   :  { %v4775_v11 = vpop.f32.mrb[11].mxu0  ;;  %4779 = vmatmul.mubr.msk.f32.vlgmr.msra.gmra.mrb[4].mxu0 %vm207_vm6, %v1769_v10  ;;  %v2043_v10 = vld [vmem:[%s6009_s10 + $0x30] sm:$0xff] }
 0xc99   :  { %5014 = vmatpush3.bf16.msra.mxu0 %v5011_v37  ;;  %v2044_v11 = vld [vmem:[%s6009_s10 + $0x38] sm:$0xff] }
 0xc9a   :  { %5016 = vmatprep.subr.bf16.mxu0 %v5015_v7 }
 0xc9d   :  { %5018 = vmatpush3.bf16.msra.mxu0 %v5015_v7  ;;  %v4439_v7 = vld [vmem:[%s6002_s3 + $0x28] sm:$0xff] }
 0xc9e   :  { %5020 = vmatprep.subr.bf16.mxu0 %v5019_v9  ;;  %v5043_v48 = vpack.c.bf16 %v4439_v7, %v4438_v6 }
 0xca0   :  { %5044 = vmatprep.subr.bf16.mxu1 %v5043_v48 }
 0xca1   :  { %5022 = vmatpush3.bf16.msra.mxu0 %v5019_v9  ;;  %v4441_v9 = vld [vmem:[%s6002_s3 + $0x38] sm:$0xff] }
 0xd6b   :  { %v4780_v12 = vpop.f32.mrb[4].mxu0 }
 0xd6c   :  { %v1859_v14 = vadd.f32 %v4780_v12, %v5369_v1  ;;  %v1847_v15 = vpop.f32.mrb[5].mxu0  ;;  %v5023_v12 = vpack.c.bf16 %v2044_v11, %v2043_v10  ;;  %v5047_v10 = vpack.c.bf16 %v4441_v9, %v4440_v8 }
 0xd6d   :  { %v1858_v16 = vadd.f32 %v1847_v15, %v5364_v0 }
 0xd6e   :  { %v5578_v17 = vadd.f32 %v4427_v13, %v1859_v14  ;;  %5024 = vmatprep.subr.bf16.mxu0 %v5023_v12  ;;  %v2046_v14 = vld [vmem:[%s6009_s10 + $0x48] sm:$0xff] }
 0xd6f   :  { %v5580_v18 = vadd.f32 %v4427_v13, %v1858_v16  ;;  %5026 = vmatpush3.bf16.msra.mxu0 %v5023_v12  ;;  %v2045_v13 = vld [vmem:[%s6009_s10 + $0x40] sm:$0xff]  ;;  %v2047_v16 = vld [vmem:[%s6009_s10 + $0x50] sm:$0xff] }
 0xd70   :  { %v1874_v19 = vsel %vm61_vm0, %v5578_v17, 0.0  ;;  %v5027_v15 = vpack.c.bf16 %v2046_v14, %v2045_v13 }
 0xd71   :  { %1875 = vadd.xlane.f32.xlu0 %v1874_v19  ;;  %v1871_v20 = vsel %vm61_vm0, %v5580_v18, 0.0  ;;  %v2048_v19 = vld [vmem:[%s6009_s10 + $0x58] sm:$0xff] }
 0xd72   :  { %1872 = vadd.xlane.f32.xlu1 %v1871_v20  ;;  %v5031_v20 = vpack.c.bf16 %v2048_v19, %v2047_v16  ;;  %5028 = vmatprep.subr.bf16.mxu0 %v5027_v15 }
 0xd73   :  { %5030 = vmatpush3.bf16.msra.mxu0 %v5027_v15 }
 0xd74   :  { %5032 = vmatprep.subr.bf16.mxu0 %v5031_v20 }
 0xd77   :  { %5034 = vmatpush3.bf16.msra.mxu0 %v5031_v20 }
 0xdfe   :  { %v1876_v21 = vpop.xlane.xlu0 %1875 }
 0xdff   :  { %v1878_v22 = vmul.f32 0.03125, %v1876_v21  ;;  %v1873_v23 = vpop.xlane.xlu1 %1872  ;;  %v2049_v21 = vld [vmem:[%s6009_s10 + $0x60] sm:$0xff] }
 0xe00   :  { %v1877_v24 = vmul.f32 0.03125, %v1873_v23 }
 0xe01   :  { %v1880_v1 = vsub.f32 %v5578_v17, %v1878_v22  ;;  %v2050_v22 = vld [vmem:[%s6009_s10 + $0x68] sm:$0xff] }
 0xe02   :  { %v1879_v0 = vsub.f32 %v5580_v18, %v1877_v24  ;;  %v5035_v23 = vpack.c.bf16 %v2050_v22, %v2049_v21  ;;  %v2051_v24 = vld [vmem:[%s6009_s10 + $0x70] sm:$0xff] }
 0xe03   :  { %v1882_v26 = vmul.f32 %v1880_v1, %v1880_v1 }
 0xe04   :  { %v1881_v27 = vmul.f32 %v1879_v0, %v1879_v0  ;;  %5036 = vmatprep.subr.bf16.mxu0 %v5035_v23 }
 0xe05   :  { %v1886_v29 = vsel %vm61_vm0, %v1882_v26, 0.0  ;;  %5038 = vmatpush3.bf16.msra.mxu0 %v5035_v23  ;;  %v4430_v26 = vld [vmem:[%s6008_s9] ss:$0 sm:$0xff] }
 0xe06   :  { %1887 = vadd.xlane.f32.xlu1 %v1886_v29  ;;  %v1883_v30 = vsel %vm61_vm0, %v1881_v27, 0.0 }
 0xe07   :  { %1884 = vadd.xlane.f32.xlu0 %v1883_v30 }
 0xe93   :  { %v1888_v38 = vpop.xlane.xlu1 %1887 }
 0xe94   :  { %v1890_v39 = vmul.f32 0.03125, %v1888_v38  ;;  %v1885_v40 = vpop.xlane.xlu0 %1884 }
 0xe95   :  { %v1889_v41 = vmul.f32 0.03125, %v1885_v40 }
 0xe96   :  { %v1892_v42 = vadd.f32 1e-05, %v1890_v39 }
 0xe97   :  { %v1891_v43 = vadd.f32 1e-05, %v1889_v41 }
 0xe98   :  { %5168 = vrsqrt.f32 %v1892_v42  ;;  %vm1902_vm8 = vcmp.eq.f32.partialorder %v1892_v42, inf  ;;  %v1905_v50 = vand.u32 2147483648, %v1892_v42  ;;  %vm1904_vm9 = vcmp.eq.f32.partialorder %v1892_v42, 0.0 }
 0xe99   :  { %5170 = vrsqrt.f32 %v1891_v43  ;;  %vm1895_vm10 = vcmp.eq.f32.partialorder %v1891_v43, inf  ;;  %v1898_v53 = vand.u32 2147483648, %v1891_v43  ;;  %vm1897_vm11 = vcmp.eq.f32.partialorder %v1891_v43, 0.0 }
 0xea2   :  { %v5169_v44 = vpop.eup %5168 }
 0xea3   :  { %v5171_v45 = vpop.eup %5170  ;;  %v1901_v49 = vmul.f32 %v5169_v44, %v1892_v42 }
 0xea4   :  { %v1894_v51 = vmul.f32 %v5171_v45, %v1891_v43 }
 0xea5   :  { %v1903_v52 = vsel %vm1902_vm8, %v1892_v42, %v1901_v49 }
 0xea6   :  { %v1906_v54 = vsel %vm1904_vm9, %v1905_v50, %v1903_v52  ;;  %v1896_v56 = vsel %vm1895_vm10, %v1891_v43, %v1894_v51  ;;  %v4433_v52 = vld [vmem:[%s6010_s11] ss:$0 sm:$0xff] }
 0xea7   :  { %5172 = vrcp.f32 %v1906_v54  ;;  %v1899_v57 = vsel %vm1897_vm11, %v1898_v53, %v1896_v56 }
 0xea8   :  { %5174 = vrcp.f32 %v1899_v57 }
 0xeb1   :  { %v5173_v58 = vpop.eup %5172 }
 0xeb2   :  { %v5175_v60 = vpop.eup %5174  ;;  %v1910_v61 = vmul.f32 %v5173_v58, %v1880_v1  ;;  %v2052_v1 = vld [vmem:[%s6009_s10 + $0x78] sm:$0xff] }
 0xeb3   :  { %v1908_v62 = vmul.f32 %v5175_v60, %v1879_v0  ;;  %v5039_v0 = vpack.c.bf16 %v2052_v1, %v2051_v24 }
 0xeb4   :  { %v1918_v2 = vmul.f32 %v4428_v59, %v1910_v61 }
 0xeb5   :  { %v1917_v3 = vmul.f32 %v4428_v59, %v1908_v62  ;;  %5040 = vmatprep.subr.bf16.mxu0 %v5039_v0 }
 0xeb6   :  { %v1926_v5 = vadd.f32 %v4429_v63, %v1918_v2  ;;  %5042 = vmatpush3.bf16.msra.mxu0 %v5039_v0 }
 0xeb7   :  { %v1925_v4 = vadd.f32 %v4429_v63, %v1917_v3  ;;  %4868 = vmatprep.subr.mxu0 %v5264_v46 }
 0xeb9   :  { %4789 = vmatprep.mubr.msk.f32.mxu1 %vm61_vm0, %v1925_v4 }
 0xeba   :  { %4790 = vmatmul.mubr.msk.f32.vlgmr.msra.gmra.mrb[24].mxu1 %vm61_vm0, %v1926_v5 }
 0xebb   :  { %5046 = vmatpush3.bf16.msra.mxu1 %v5043_v48 }
 0xebc   :  { %5048 = vmatprep.subr.bf16.mxu1 %v5047_v10 }
 0xebf   :  { %5050 = vmatpush3.bf16.msra.mxu1 %v5047_v10 }
 0xec0   :  { %4838 = vmatprep.subr.mxu1 %v5264_v46 }
 0xf8d   :  { %v4791_v27 = vpop.f32.mrb[24].mxu1 }
 0xf8e   :  { %v2016_v29 = vadd.f32 %v4791_v27, %v4430_v26  ;;  %v2010_v30 = vpop.f32.mrb[25].mxu1 }
 0xf8f   :  { %v2011_v31 = vadd.f32 %v4430_v26, %v2010_v30  ;;  %v4436_v30 = vld [vmem:[%s6000_s1 + $0x1] ss:$0 sm:$0xff]  ;;  %s6025_s1 = smov 112  }
 0xf90   :  { %v2022_v25 = vmul.f32 %v2016_v29, %v2016_v29  ;;  %v2020_v45 = vmul.f32 0.5, %v2016_v29 }
 0xf91   :  { %v2021_v32 = vmul.f32 %v2011_v31, %v2011_v31  ;;  %v2019_v43 = vmul.f32 0.5, %v2011_v31 }
 0xf92   :  { %v2024_v28 = vmul.f32 %v2022_v25, %v2016_v29 }
 0xf93   :  { %v2023_v33 = vmul.f32 %v2021_v32, %v2011_v31 }
 0xf94   :  { %v2026_v34 = vmul.f32 0.044715, %v2024_v28  ;;  %v4437_v28 = vld [vmem:[%s6001_s2 + $0x1] ss:$0 sm:$0xff]  ;;  %s6026_s2 = smov 48  }
 0xf95   :  { %v2025_v35 = vmul.f32 0.044715, %v2023_v33 }
 0xf96   :  { %v2028_v36 = vadd.f32 %v2026_v34, %v2016_v29 }
 0xf97   :  { %v2027_v37 = vadd.f32 %v2025_v35, %v2011_v31 }
 0xf98   :  { %v2030_v38 = vmul.f32 0.7978845, %v2028_v36 }
 0xf99   :  { %v2029_v39 = vmul.f32 0.7978845, %v2027_v37 }
 0xf9a   :  { %5176 = vtanh.f32 %v2030_v38 }
 0xf9b   :  { %5178 = vtanh.f32 %v2029_v39 }
 0xfa4   :  { %v5177_v40 = vpop.eup %5176 }
 0xfa5   :  { %v5179_v41 = vpop.eup %5178  ;;  %v2034_v42 = vadd.f32 1.0, %v5177_v40 }
 0xfa6   :  { %v2033_v44 = vadd.f32 1.0, %v5179_v41 }
 0xfa7   :  { %v2036_v50 = vmul.f32 %v2034_v42, %v2020_v45 }
 0xfa8   :  { %v2035_v49 = vmul.f32 %v2033_v44, %v2019_v43 }
 0xfaa   :  { %4824 = vmatprep.mubr.f32.mxu0 %v2035_v49 }
 0xfab   :  { %4825 = vmatmul.mubr.f32.vlgmr.msra.gmra.mrb[12].mxu0 %v2036_v50 }
 0xfac   :  { %4870 = vmatprep.mubr.msk.f32.mxu0 %vm5265_vm5, %v5264_v46 }
0x107e   :  { %v4826_v51 = vpop.f32.mrb[12].mxu0 }
0x107f   :  { %v2129_v53 = vadd.f32 %v4826_v51, %v5578_v17  ;;  %v2119_v54 = vpop.f32.mrb[13].mxu0 }
0x1080   :  { %v2128_v56 = vadd.f32 %v2119_v54, %v5580_v18 }
0x1081   :  { %v5669_v57 = vadd.f32 %v4433_v52, %v2129_v53 }
0x1082   :  { %v5671_v58 = vadd.f32 %v4433_v52, %v2128_v56 }
0x1083   :  { %v2146_v59 = vsel %vm61_vm0, %v5669_v57, 0.0 }
0x1084   :  { %2147 = vadd.xlane.f32.xlu1 %v2146_v59  ;;  %v2143_v60 = vsel %vm61_vm0, %v5671_v58, 0.0 }
0x1085   :  { %2144 = vadd.xlane.f32.xlu0 %v2143_v60 }
0x1111   :  { %v2148_v61 = vpop.xlane.xlu1 %2147 }
0x1112   :  { %v2150_v62 = vmul.f32 0.03125, %v2148_v61  ;;  %v2145_v63 = vpop.xlane.xlu0 %2144 }
0x1113   :  { %v2149_v2 = vmul.f32 0.03125, %v2145_v63 }
0x1114   :  { %v2152_v17 = vsub.f32 %v5669_v57, %v2150_v62 }
0x1115   :  { %v2151_v18 = vsub.f32 %v5671_v58, %v2149_v2 }
0x1116   :  { %v2154_v3 = vmul.f32 %v2152_v17, %v2152_v17 }
0x1117   :  { %v2153_v4 = vmul.f32 %v2151_v18, %v2151_v18 }
0x1118   :  { %v2158_v5 = vsel %vm61_vm0, %v2154_v3, 0.0 }
0x1119   :  { %2159 = vadd.xlane.f32.xlu1 %v2158_v5  ;;  %v2155_v47 = vsel %vm61_vm0, %v2153_v4, 0.0 }
0x111a   :  { %2156 = vadd.xlane.f32.xlu0 %v2155_v47 }
0x11a6   :  { %v2160_v11 = vpop.xlane.xlu1 %2159 }
0x11a7   :  { %v2162_v12 = vmul.f32 0.03125, %v2160_v11  ;;  %v2157_v13 = vpop.xlane.xlu0 %2156 }
0x11a8   :  { %v2161_v14 = vmul.f32 0.03125, %v2157_v13 }
0x11a9   :  { %v2164_v15 = vadd.f32 1e-05, %v2162_v12 }
0x11aa   :  { %v2163_v16 = vadd.f32 1e-05, %v2161_v14 }
0x11ab   :  { %5180 = vrsqrt.f32 %v2164_v15  ;;  %vm2174_vm12 = vcmp.eq.f32.partialorder %v2164_v15, inf  ;;  %v2177_v22 = vand.u32 2147483648, %v2164_v15  ;;  %vm2176_vm13 = vcmp.eq.f32.partialorder %v2164_v15, 0.0 }
0x11ac   :  { %5182 = vrsqrt.f32 %v2163_v16  ;;  %vm2167_vm14 = vcmp.eq.f32.partialorder %v2163_v16, inf  ;;  %v2170_v1 = vand.u32 2147483648, %v2163_v16  ;;  %vm2169_vm15 = vcmp.eq.f32.partialorder %v2163_v16, 0.0 }
0x11b5   :  { %v5181_v19 = vpop.eup %5180 }
0x11b6   :  { %v5183_v20 = vpop.eup %5182  ;;  %v2173_v21 = vmul.f32 %v5181_v19, %v2164_v15 }
0x11b7   :  { %v2166_v23 = vmul.f32 %v5183_v20, %v2163_v16 }
0x11b8   :  { %v2175_v24 = vsel %vm2174_vm12, %v2164_v15, %v2173_v21 }
0x11b9   :  { %v2178_v0 = vsel %vm2176_vm13, %v2177_v22, %v2175_v24  ;;  %v2168_v26 = vsel %vm2167_vm14, %v2163_v16, %v2166_v23 }
0x11ba   :  { %5184 = vrcp.f32 %v2178_v0  ;;  %v2171_v27 = vsel %vm2169_vm15, %v2170_v1, %v2168_v26 }
0x11bb   :  { %5186 = vrcp.f32 %v2171_v27 }
0x11c4   :  { %v5185_v29 = vpop.eup %5184 }
0x11c5   :  { %v5187_v31 = vpop.eup %5186  ;;  %v2182_v25 = vmul.f32 %v5185_v29, %v2152_v17 }
0x11c6   :  { %v2180_v32 = vmul.f32 %v5187_v31, %v2151_v18 }
0x11c7   :  { %v2190_v33 = vmul.f32 %v4436_v30, %v2182_v25 }
0x11c8   :  { %v2189_v34 = vmul.f32 %v4436_v30, %v2180_v32 }
0x11c9   :  { %v2198_v36 = vadd.f32 %v4437_v28, %v2190_v33 }
0x11ca   :  { %v2197_v35 = vadd.f32 %v4437_v28, %v2189_v34 }
0x11cc   :  { %4835 = vmatprep.mubr.msk.f32.mxu1 %vm61_vm0, %v2197_v35 }
0x11cd   :  { %4836 = vmatmul.mubr.msk.f32.vlgmr.msra.gmra.mrb[26].mxu1 %vm61_vm0, %v2198_v36 }
0x11ce   :  { %4840 = vmatprep.mubr.msk.f32.mxu1 %vm5265_vm5, %v5264_v46 }
0x12a0   :  { %v5704_v37 = vpop.f32.mrb[26].mxu1 }
0x12a1   :  { %2363 = vrot.lane.b32.xlu1 %v5704_v37, %s5266_s18  ;;  %v5708_v38 = vpop.f32.mrb[27].mxu1 }
0x12a2   :  { %2286 = vrot.lane.b32.xlu0 %v5708_v38, %s5266_s18  ;;  %s6027_s18 = smov 72  }
0x1313   :  { %v2364_v40 = vpop.permute.xlu1 %2363 }
0x1314   :  { %v2287_v39 = vpop.permute.xlu0 %2286 }
0x1315   :  { %4839 = vmatpush3.xpose.msk.msra.mxu1 %vm207_vm6, %v2287_v39 }
0x1316   :  { %4843 = vmatprep.subr.mxu1 %v5264_v46 }
0x1318   :  { %4841 = vmatmul.mubr.msk.f32.vlgmr.msra.gmra.mrb[28].mxu1 %vm207_vm6, %v5708_v38 }
0x1319   :  { %4844 = vmatpush3.xpose.msk.msra.mxu1 %vm207_vm6, %v2364_v40  ;;  %4845 = vmatprep.mubr.msk.f32.mxu1 %vm5265_vm5, %v5264_v46 }
0x131a   :  { %4848 = vmatprep.subr.mxu1 %v5264_v46 }
0x131c   :  { %4846 = vmatmul.mubr.msk.f32.vlgmr.msra.gmra.mrb[30].mxu1 %vm207_vm6, %v5704_v37 }
0x131d   :  { %4850 = vmatprep.mubr.msk.f32.mxu1 %vm5265_vm5, %v5264_v46 }
0x13eb   :  { %v2358_v41 = vpop.f32.mrb[28].mxu1 }
0x13ec   :  { %v2359_v42 = vadd.f32 %v2358_v41, %v5425_v55  ;;  %v4842_v43 = vpop.f32.mrb[29].mxu1 }
0x13ee   :  { %v2439_v44 = vsel %vm207_vm6, %v2359_v42, -inf }
0x13ef   :  { %2440 = vmax.xlane.f32.xlu1 %v2439_v44  ;;  %v2435_v45 = vpop.f32.mrb[30].mxu1 }
0x13f0   :  { %v2436_v49 = vadd.f32 %v2435_v45, %v5425_v55  ;;  %v4847_v50 = vpop.f32.mrb[31].mxu1 }
0x13f2   :  { %v2442_v51 = vsel %vm207_vm6, %v2436_v49, -inf }
0x13f3   :  { %2443 = vmax.xlane.f32.xlu0 %v2442_v51 }
0x1400   :  { %2537 = vrot.lane.b32.xlu1 %v5704_v37, %s5268_s19 }
0x1404   :  { %2617 = vrot.lane.b32.xlu1 %v5708_v38, %s5269_s20 }
0x1408   :  { %2615 = vrot.lane.b32.xlu1 %v5708_v38, %s5270_s21 }
0x147c   :  { %v2441_v52 = vpop.xlane.xlu1 %2440 }
0x147d   :  { %v2445_v53 = vsub.f32 %v2359_v42, %v2441_v52 }
0x147f   :  { %v2447_v54 = vmul.f32 1.442695, %v2445_v53 }
0x1480   :  { %v2444_v56 = vpop.xlane.xlu0 %2443  ;;  %v2538_v17 = vpop.permute.xlu1 %2537 }
0x1481   :  { %5188 = vpow2.f32 %v2447_v54  ;;  %v2446_v59 = vsub.f32 %v2436_v49, %v2444_v56 }
0x1483   :  { %v2449_v60 = vmul.f32 1.442695, %v2446_v59 }
0x1484   :  { %v2618_v18 = vpop.permute.xlu1 %2617 }
0x1485   :  { %5190 = vpow2.f32 %v2449_v60 }
0x1488   :  { %v2616_v3 = vpop.permute.xlu1 %2615 }
0x148b   :  { %v5189_v61 = vpop.eup %5188 }
0x148c   :  { %v2451_v62 = vsel %vm207_vm6, %v5189_v61, 0.0 }
0x148d   :  { %2452 = vadd.xlane.f32.xlu0 %v2451_v62 }
0x148f   :  { %v5191_v63 = vpop.eup %5190 }
0x1490   :  { %v2454_v2 = vsel %vm207_vm6, %v5191_v63, 0.0 }
0x1491   :  { %2455 = vadd.xlane.f32.xlu1 %v2454_v2  ;;  %v4457_v2 = vld [vmem:[%s6003_s4 + $0x28] sm:$0xff] }
0x14a2   :  { %2693 = vrot.lane.b32.xlu1 %v5704_v37, %s5270_s21 }
0x14a3   :  { %2461 = vrot.lane.b32.xlu0 %v5708_v38, %s5268_s19  ;;  %s6028_s19 = smov 104  }
0x14a6   :  { %3111 = vrot.lane.b32.xlu1 %v5708_v38, %s5271_s0 }
0x14a7   :  { %2695 = vrot.lane.b32.xlu0 %v5704_v37, %s5269_s20 }
0x151a   :  { %v2453_v4 = vpop.xlane.xlu0 %2452 }
0x151b   :  { %5192 = vrcp.f32 %v2453_v4 }
0x151e   :  { %v2456_v5 = vpop.xlane.xlu1 %2455  ;;  %v2462_v47 = vpop.permute.xlu0 %2461 }
0x151f   :  { %5194 = vrcp.f32 %v2456_v5  ;;  %4849 = vmatpush3.msra.mxu1 %v2462_v47 }
0x1520   :  { %4853 = vmatprep.subr.mxu1 %v5264_v46 }
0x1522   :  { %v2696_v9 = vpop.permute.xlu0 %2695  ;;  %v2694_v10 = vpop.permute.xlu1 %2693 }
0x1525   :  { %v5193_v6 = vpop.eup %5192 }
0x1526   :  { %v2459_v7 = vmul.f32 %v5193_v6, %v5189_v61  ;;  %v3112_v31 = vpop.permute.xlu1 %3111 }
0x1528   :  { %4851 = vmatmul.mubr.msk.f32.vlgmr.msra.gmra.mrb[32].mxu1 %vm207_vm6, %v2459_v7 }
0x1529   :  { %v5195_v8 = vpop.eup %5194  ;;  %4854 = vmatpush3.msra.mxu1 %v2538_v17  ;;  %4855 = vmatprep.mubr.msk.f32.mxu1 %vm5265_vm5, %v5264_v46  ;;  %v4450_v17 = vld [vmem:[%s6003_s4 + $0x20] sm:$0xff] }
0x152a   :  { %v2460_v48 = vmul.f32 %v5195_v8, %v5191_v63  ;;  %4858 = vmatprep.subr.mxu1 %v5264_v46 }
0x152c   :  { %4856 = vmatmul.mubr.msk.f32.vlgmr.msra.gmra.mrb[34].mxu1 %vm207_vm6, %v2460_v48 }
0x152d   :  { %4860 = vmatprep.mubr.msk.f32.mxu1 %vm5265_vm5, %v5264_v46 }
0x1530   :  { %4859 = vmatpush3.xpose.msk.msra.mxu1 %vm207_vm6, %v2618_v18 }
0x1531   :  { %4863 = vmatprep.subr.mxu1 %v5264_v46 }
0x1533   :  { %4861 = vmatmul.mubr.msk.f32.vlgmr.msra.gmra.mrb[36].mxu1 %vm207_vm6, %v2616_v3 }
0x1534   :  { %4864 = vmatpush3.xpose.msk.msra.mxu1 %vm207_vm6, %v2696_v9  ;;  %4865 = vmatprep.mubr.msk.f32.mxu1 %vm5265_vm5, %v5264_v46 }
0x1535   :  { %4873 = vmatprep.subr.mxu1 %v5264_v46 }
0x1537   :  { %4866 = vmatmul.mubr.msk.f32.vlgmr.msra.gmra.mrb[38].mxu1 %vm207_vm6, %v2694_v10 }
0x1538   :  { %4875 = vmatprep.mubr.msk.f32.mxu1 %vm5265_vm5, %v5264_v46 }
0x15fb   :  { %v5762_v11 = vpop.f32.mrb[32].mxu1 }
0x15fc   :  { %v4852_v12 = vpop.f32.mrb[33].mxu1 }
0x15ff   :  { %v5764_v13 = vpop.f32.mrb[34].mxu1 }
0x1600   :  { %v4857_v14 = vpop.f32.mrb[35].mxu1 }
0x1606   :  { %v2689_v15 = vpop.f32.mrb[36].mxu1 }
0x1607   :  { %v4862_v16 = vpop.f32.mrb[37].mxu1  ;;  %v2690_v29 = vadd.f32 %v2689_v15, %v5425_v55 }
0x1608   :  { %v4468_v16 = vld [vmem:[%s6003_s4 + $0x30] sm:$0xff] }
0x1609   :  { %v2771_v30 = vsel %vm207_vm6, %v2690_v29, -inf }
0x160a   :  { %v2767_v19 = vpop.f32.mrb[38].mxu1 }
0x160b   :  { %v2768_v20 = vadd.f32 %v2767_v19, %v5425_v55  ;;  %v4867_v21 = vpop.f32.mrb[39].mxu1 }
0x160d   :  { %v2774_v22 = vsel %vm207_vm6, %v2768_v20, -inf }
0x160e   :  { %2775 = vmax.xlane.f32.xlu0 %v2774_v22 }
0x1624   :  { %2869 = vrot.lane.b32.xlu0 %v5704_v37, %s5272_s22 }
0x1628   :  { %3109 = vrot.lane.b32.xlu0 %v5708_v38, %s6025_s1 }
0x162c   :  { %3187 = vrot.lane.b32.xlu0 %v5704_v37, %s6025_s1 }
0x169b   :  { %v2776_v23 = vpop.xlane.xlu0 %2775 }
0x169c   :  { %v2778_v24 = vsub.f32 %v2768_v20, %v2776_v23 }
0x169e   :  { %v2781_v1 = vmul.f32 1.442695, %v2778_v24 }
0x169f   :  { %v2870_v0 = vpop.permute.xlu0 %2869 }
0x16a0   :  { %5196 = vpow2.f32 %v2781_v1  ;;  %4874 = vmatpush3.msra.mxu1 %v2870_v0 }
0x16a1   :  { %4888 = vmatprep.subr.mxu1 %v5264_v46 }
0x16a3   :  { %v3110_v33 = vpop.permute.xlu0 %3109 }
0x16a7   :  { %v3188_v35 = vpop.permute.xlu0 %3187 }
0x16aa   :  { %v5197_v26 = vpop.eup %5196 }
0x16ab   :  { %v2786_v27 = vsel %vm207_vm6, %v5197_v26, 0.0 }
0x16ac   :  { %2787 = vadd.xlane.f32.xlu1 %v2786_v27 }
0x16bd   :  { %3189 = vrot.lane.b32.xlu1 %v5704_v37, %s5271_s0 }
0x16e1   :  { %2772 = vmax.xlane.f32.xlu1 %v2771_v30 }
0x1739   :  { %v2788_v25 = vpop.xlane.xlu1 %2787 }
0x173a   :  { %5198 = vrcp.f32 %v2788_v25 }
0x173d   :  { %v3190_v34 = vpop.permute.xlu1 %3189 }
0x1744   :  { %v5199_v32 = vpop.eup %5198 }
0x1745   :  { %v2792_v28 = vmul.f32 %v5199_v32, %v5197_v26 }
0x1747   :  { %4876 = vmatmul.mubr.msk.f32.vlgmr.msra.gmra.mrb[40].mxu1 %vm207_vm6, %v2792_v28 }
0x1748   :  { %4889 = vmatpush3.xpose.msk.msra.mxu1 %vm207_vm6, %v3112_v31  ;;  %4890 = vmatprep.mubr.msk.f32.mxu1 %vm5265_vm5, %v5264_v46 }
0x1749   :  { %4893 = vmatprep.subr.mxu1 %v5264_v46 }
0x174b   :  { %4891 = vmatmul.mubr.msk.f32.vlgmr.msra.gmra.mrb[42].mxu1 %vm207_vm6, %v3110_v33 }
0x174c   :  { %4894 = vmatpush3.xpose.msk.msra.mxu1 %vm207_vm6, %v3190_v34  ;;  %4895 = vmatprep.mubr.msk.f32.mxu1 %vm5265_vm5, %v5264_v46 }
0x174d   :  { %4903 = vmatprep.subr.mxu1 %v5264_v46 }
0x174f   :  { %4896 = vmatmul.mubr.msk.f32.vlgmr.msra.gmra.mrb[44].mxu1 %vm207_vm6, %v3188_v35 }
0x1750   :  { %4905 = vmatprep.mubr.msk.f32.mxu1 %vm5265_vm5, %v5264_v46 }
0x176e   :  { %v2773_v36 = vpop.xlane.xlu1 %2772 }
0x176f   :  { %v2777_v39 = vsub.f32 %v2690_v29, %v2773_v36 }
0x1771   :  { %v2779_v40 = vmul.f32 1.442695, %v2777_v39 }
0x1773   :  { %5200 = vpow2.f32 %v2779_v40 }
0x177d   :  { %v5201_v41 = vpop.eup %5200 }
0x177e   :  { %v2783_v42 = vsel %vm207_vm6, %v5201_v41, 0.0 }
0x177f   :  { %2784 = vadd.xlane.f32.xlu0 %v2783_v42 }
0x1795   :  { %2793 = vrot.lane.b32.xlu0 %v5708_v38, %s5272_s22 }
0x1799   :  { %3363 = vrot.lane.b32.xlu0 %v5704_v37, %s6026_s2 }
0x179d   :  { %3526 = vrot.lane.b32.xlu0 %v5708_v38, %s6027_s18 }
0x17a1   :  { %3604 = vrot.lane.b32.xlu0 %v5704_v37, %s6027_s18  ;;  %s5278_s18 = smov [#allocation2]  }
0x17a5   :  { %3524 = vrot.lane.b32.xlu0 %v5708_v38, %s6028_s19 }
0x180c   :  { %v2785_v43 = vpop.xlane.xlu0 %2784 }
0x180d   :  { %5202 = vrcp.f32 %v2785_v43 }
0x1810   :  { %v2794_v44 = vpop.permute.xlu0 %2793 }
0x1811   :  { %4869 = vmatpush3.msra.mxu0 %v2794_v44 }
0x1812   :  { %4878 = vmatprep.subr.mxu0 %v4457_v2 }
0x1814   :  { %v3364_v45 = vpop.permute.xlu0 %3363 }
0x1815   :  { %4904 = vmatpush3.msra.mxu1 %v3364_v45 }
0x1816   :  { %4913 = vmatprep.subr.mxu1 %v5264_v46 }
0x1817   :  { %v5203_v49 = vpop.eup %5202 }
0x1818   :  { %v2791_v50 = vmul.f32 %v5203_v49, %v5201_v41  ;;  %v3527_v20 = vpop.permute.xlu0 %3526 }
0x181a   :  { %4871 = vmatmul.mubr.msk.f32.vlgmr.msra.gmra.mrb[14].mxu0 %vm207_vm6, %v2791_v50  ;;  %v2941_v51 = vpop.f32.mrb[40].mxu1 }
0x181b   :  { %v4877_v52 = vpop.f32.mrb[41].mxu1  ;;  %4879 = vmatpush3.msra.mxu0 %v4457_v2  ;;  %v4481_v2 = vld [vmem:[%s6004_s5 + $0x1] ss:$0 sm:$0xff] }
0x181c   :  { %4883 = vmatprep.subr.mxu0 %v4450_v17  ;;  %v3605_v22 = vpop.permute.xlu0 %3604 }
0x181e   :  { %v3183_v53 = vpop.f32.mrb[42].mxu1 }
0x181f   :  { %v3184_v54 = vadd.f32 %v3183_v53, %v5425_v55  ;;  %v4892_v56 = vpop.f32.mrb[43].mxu1 }
0x1820   :  { %v3525_v24 = vpop.permute.xlu0 %3524 }
0x1821   :  { %v3265_v59 = vsel %vm207_vm6, %v3184_v54, -inf }
0x1822   :  { %3266 = vmax.xlane.f32.xlu1 %v3265_v59  ;;  %v3261_v60 = vpop.f32.mrb[44].mxu1  ;;  %v4477_v59 = vld [vmem:[%s6003_s4 + $0x38] sm:$0xff] }
0x1823   :  { %v3262_v61 = vadd.f32 %v3261_v60, %v5425_v55  ;;  %v4897_v62 = vpop.f32.mrb[45].mxu1 }
0x1825   :  { %v3268_v63 = vsel %vm207_vm6, %v3262_v61, -inf }
0x1826   :  { %3269 = vmax.xlane.f32.xlu1 %v3268_v63 }
0x18af   :  { %v3267_v18 = vpop.xlane.xlu1 %3266 }
0x18b0   :  { %v3271_v3 = vsub.f32 %v3184_v54, %v3267_v18 }
0x18b2   :  { %v3273_v4 = vmul.f32 1.442695, %v3271_v3 }
0x18b3   :  { %v3270_v5 = vpop.xlane.xlu1 %3269 }
0x18b4   :  { %5204 = vpow2.f32 %v3273_v4  ;;  %v3272_v47 = vsub.f32 %v3262_v61, %v3270_v5 }
0x18b6   :  { %v3275_v6 = vmul.f32 1.442695, %v3272_v47 }
0x18b8   :  { %5206 = vpow2.f32 %v3275_v6 }
0x18be   :  { %v5205_v7 = vpop.eup %5204 }
0x18bf   :  { %v3277_v8 = vsel %vm207_vm6, %v5205_v7, 0.0 }
0x18c0   :  { %3278 = vadd.xlane.f32.xlu1 %v3277_v8 }
0x18c2   :  { %v5207_v48 = vpop.eup %5206 }
0x18c3   :  { %v3280_v9 = vsel %vm207_vm6, %v5207_v48, 0.0 }
0x18c4   :  { %3281 = vadd.xlane.f32.xlu1 %v3280_v9 }
0x18d5   :  { %3287 = vrot.lane.b32.xlu1 %v5708_v38, %s6026_s2 }
0x18d9   :  { %3602 = vrot.lane.b32.xlu1 %v5704_v37, %s6028_s19  ;;  %s4377_s19 = sshll.u32 %s5278_s18, 4  ;;  %s4378_s19 = int_to_ptr.vmem [resolvable:$true] %s4377_s19 }
0x18da   :  { %p5245_p1 = scmp.lt.s32.totalorder %s4378_s19, %s4378_s19 }
0x18ed   :  { %v2865_v10 = vpop.f32.mrb[14].mxu0 }
0x18ee   :  { %v4872_v12 = vpop.f32.mrb[15].mxu0  ;;  %4880 = vmatprep.mubr.msk.f32.mxu0 %vm207_vm6, %v2865_v10 }
0x18ef   :  { %4881 = vmatmul.mubr.msk.f32.vlgmr.msra.gmra.mrb[16].mxu0 %vm207_vm6, %v2941_v51 }
0x18f0   :  { %4885 = vmatprep.mubr.msk.f32.mxu0 %vm207_vm6, %v5762_v11  ;;  %4884 = vmatpush3.msra.mxu0 %v4450_v17 }
0x18f1   :  { %4898 = vmatprep.subr.mxu0 %v5264_v46 }
0x18f7   :  { %4886 = vmatmul.mubr.msk.f32.vlgmr.msra.gmra.mrb[16].mxu0 %vm207_vm6, %v5764_v13 }
0x18f8   :  { %4900 = vmatprep.mubr.msk.f32.mxu0 %vm5265_vm5, %v5264_v46 }
0x194d   :  { %v3279_v14 = vpop.xlane.xlu1 %3278 }
0x194e   :  { %5208 = vrcp.f32 %v3279_v14 }
0x1951   :  { %v3282_v15 = vpop.xlane.xlu1 %3281 }
0x1952   :  { %5210 = vrcp.f32 %v3282_v15 }
0x1955   :  { %v3288_v19 = vpop.permute.xlu1 %3287 }
0x1956   :  { %4899 = vmatpush3.msra.mxu0 %v3288_v19  ;;  %v4487_v19 = vld [vmem:[%s6007_s8 + $0x28] sm:$0xff] }
0x1957   :  { %4908 = vmatprep.subr.mxu0 %v4468_v16 }
0x1958   :  { %v5209_v11 = vpop.eup %5208 }
0x1959   :  { %v3285_v21 = vmul.f32 %v5209_v11, %v5205_v7  ;;  %v3603_v29 = vpop.permute.xlu1 %3602 }
0x195b   :  { %4901 = vmatmul.mubr.msk.f32.vlgmr.msra.gmra.mrb[18].mxu0 %vm207_vm6, %v3285_v21  ;;  %v4489_v21 = vld [vmem:[%s6007_s8 + $0x38] sm:$0xff] }
0x195c   :  { %v5211_v13 = vpop.eup %5210  ;;  %4909 = vmatpush3.msra.mxu0 %v4468_v16  ;;  %v4486_v16 = vld [vmem:[%s6007_s8 + $0x20] sm:$0xff] }
0x195d   :  { %v3286_v23 = vmul.f32 %v5211_v13, %v5207_v48  ;;  %4918 = vmatprep.subr.mxu0 %v5264_v46  ;;  %v5051_v11 = vpack.c.bf16 %v4487_v19, %v4486_v16 }
0x195f   :  { %4906 = vmatmul.mubr.msk.f32.vlgmr.msra.gmra.mrb[46].mxu1 %vm207_vm6, %v3286_v23  ;;  %v4495_v23 = vld [vmem:[%s6009_s10 + $0x88] sm:$0xff] }
0x1960   :  { %4914 = vmatpush3.xpose.msk.msra.mxu1 %vm207_vm6, %v3527_v20  ;;  %4915 = vmatprep.mubr.msk.f32.mxu1 %vm5265_vm5, %v5264_v46  ;;  %v4488_v20 = vld [vmem:[%s6007_s8 + $0x30] sm:$0xff] }
0x1961   :  { %4923 = vmatprep.subr.mxu1 %v5264_v46  ;;  %v5055_v13 = vpack.c.bf16 %v4489_v21, %v4488_v20 }
0x1963   :  { %4916 = vmatmul.mubr.msk.f32.vlgmr.msra.gmra.mrb[48].mxu1 %vm207_vm6, %v3525_v24 }
0x1964   :  { %4925 = vmatprep.mubr.msk.f32.mxu1 %vm5265_vm5, %v5264_v46 }
0x1a2e   :  { %v3359_v1 = vpop.f32.mrb[18].mxu0 }
0x1a2f   :  { %v4902_v0 = vpop.f32.mrb[19].mxu0  ;;  %4910 = vmatprep.mubr.msk.f32.mxu0 %vm207_vm6, %v3359_v1 }
0x1a32   :  { %v3435_v26 = vpop.f32.mrb[46].mxu1 }
0x1a33   :  { %v4907_v27 = vpop.f32.mrb[47].mxu1  ;;  %4911 = vmatmul.mubr.msk.f32.vlgmr.msra.gmra.mrb[16].mxu0 %vm207_vm6, %v3435_v26 }
0x1a34   :  { %4919 = vmatpush3.xpose.msk.msra.mxu0 %vm207_vm6, %v3605_v22  ;;  %4920 = vmatprep.mubr.msk.f32.mxu0 %vm5265_vm5, %v5264_v46  ;;  %v4494_v22 = vld [vmem:[%s6009_s10 + $0x80] sm:$0xff] }
0x1a35   :  { %4928 = vmatprep.subr.mxu0 %v5264_v46  ;;  %v5059_v24 = vpack.c.bf16 %v4495_v23, %v4494_v22 }
0x1a36   :  { %v3598_v30 = vpop.f32.mrb[48].mxu1 }
0x1a37   :  { %v3599_v31 = vadd.f32 %v3598_v30, %v5425_v55  ;;  %v4917_v25 = vpop.f32.mrb[49].mxu1  ;;  %4921 = vmatmul.mubr.msk.f32.vlgmr.msra.gmra.mrb[20].mxu0 %vm207_vm6, %v3603_v29 }
0x1a38   :  { %4930 = vmatprep.mubr.msk.f32.mxu0 %vm5265_vm5, %v5264_v46 }
0x1a39   :  { %v3680_v32 = vsel %vm207_vm6, %v3599_v31, -inf }
0x1a3a   :  { %3681 = vmax.xlane.f32.xlu0 %v3680_v32 }
0x1ac7   :  { %v3682_v28 = vpop.xlane.xlu0 %3681 }
0x1ac8   :  { %v3686_v33 = vsub.f32 %v3599_v31, %v3682_v28 }
0x1aca   :  { %v3688_v34 = vmul.f32 1.442695, %v3686_v33 }
0x1acc   :  { %5212 = vpow2.f32 %v3688_v34 }
0x1ad6   :  { %v5213_v35 = vpop.eup %5212 }
0x1ad7   :  { %v3692_v36 = vsel %vm207_vm6, %v5213_v35, 0.0 }
0x1ad8   :  { %3693 = vadd.xlane.f32.xlu0 %v3692_v36 }
0x1b0a   :  { %v3676_v39 = vpop.f32.mrb[20].mxu0 }
0x1b0b   :  { %v3677_v40 = vadd.f32 %v3676_v39, %v5425_v55  ;;  %v4922_v41 = vpop.f32.mrb[21].mxu0 }
0x1b0d   :  { %v3683_v42 = vsel %vm207_vm6, %v3677_v40, -inf }
0x1b0e   :  { %3684 = vmax.xlane.f32.xlu1 %v3683_v42  ;;  %v4484_v42 = vld [vmem:[%s6005_s6 + $0x1] ss:$0 sm:$0xff] }
0x1b1f   :  { %3778 = vrot.lane.b32.xlu1 %v5704_v37, %s6029_s23 }
0x1b65   :  { %v3694_v55 = vpop.xlane.xlu0 %3693 }
0x1b9b   :  { %v3685_v46 = vpop.xlane.xlu1 %3684 }
0x1b9c   :  { %v3687_v43 = vsub.f32 %v3677_v40, %v3685_v46 }
0x1b9e   :  { %v3690_v44 = vmul.f32 1.442695, %v3687_v43 }
0x1b9f   :  { %v3779_v45 = vpop.permute.xlu1 %3778 }
0x1ba0   :  { %5214 = vpow2.f32 %v3690_v44  ;;  %4929 = vmatpush3.msra.mxu0 %v3779_v45  ;;  %v4485_v45 = vld [vmem:[%s6006_s7 + $0x1] ss:$0 sm:$0xff] }
0x1ba1   :  { %5216 = vrcp.f32 %v3694_v55  ;;  %4933 = vmatprep.subr.mxu0 %v4477_v59 }
0x1baa   :  { %v5215_v49 = vpop.eup %5214 }
0x1bab   :  { %v3695_v50 = vsel %vm207_vm6, %v5215_v49, 0.0  ;;  %v5217_v52 = vpop.eup %5216 }
0x1bac   :  { %3696 = vadd.xlane.f32.xlu0 %v3695_v50  ;;  %v3700_v53 = vmul.f32 %v5217_v52, %v5213_v35  ;;  %v4496_v52 = vld [vmem:[%s6009_s10 + $0x90] sm:$0xff] }
0x1bc2   :  { %3702 = vrot.lane.b32.xlu0 %v5708_v38, %s6029_s23 }
0x1c39   :  { %v3697_v51 = vpop.xlane.xlu0 %3696 }
0x1c3a   :  { %5218 = vrcp.f32 %v3697_v51 }
0x1c3d   :  { %v3703_v37 = vpop.permute.xlu0 %3702 }
0x1c3e   :  { %4924 = vmatpush3.msra.mxu1 %v3703_v37 }
0x1c3f   :  { %4926 = vmatmul.mubr.msk.f32.vlgmr.msra.gmra.mrb[50].mxu1 %vm207_vm6, %v3700_v53  ;;  %5052 = vmatprep.subr.bf16.mxu1 %v5051_v11  ;;  %v4497_v53 = vld [vmem:[%s6009_s10 + $0x98] sm:$0xff] }
0x1c40   :  { %5054 = vmatpush3.bf16.msra.mxu1 %v5051_v11  ;;  %v5063_v37 = vpack.c.bf16 %v4497_v53, %v4496_v52  ;;  %v4286_v52 = vld [vmem:[%s6013_s14 + $0x8] sm:$0xff]  ;;  %v4287_v53 = vld [vmem:[%s6013_s14 + $0x10] sm:$0xff] }
0x1c41   :  { %5056 = vmatprep.subr.bf16.mxu1 %v5055_v13 }
0x1c44   :  { %v5219_v54 = vpop.eup %5218  ;;  %5058 = vmatpush3.bf16.msra.mxu1 %v5055_v13 }
0x1c45   :  { %v3701_v56 = vmul.f32 %v5219_v54, %v5215_v49  ;;  %v4498_v54 = vld [vmem:[%s6009_s10 + $0xa0] sm:$0xff] }
0x1c47   :  { %4931 = vmatmul.mubr.msk.f32.vlgmr.msra.gmra.mrb[22].mxu0 %vm207_vm6, %v3701_v56  ;;  %v4499_v56 = vld [vmem:[%s6009_s10 + $0xa8] sm:$0xff] }
0x1c48   :  { %4934 = vmatpush3.msra.mxu0 %v4477_v59  ;;  %v5067_v59 = vpack.c.bf16 %v4499_v56, %v4498_v54  ;;  %v4288_v54 = vld [vmem:[%s6013_s14 + $0x18] sm:$0xff] }
0x1c49   :  { %5060 = vmatprep.subr.bf16.mxu0 %v5059_v24  ;;  %v5095_v56 = vpack.c.bf16 %v4288_v54, %v4287_v53 }
0x1d12   :  { %v3774_v38 = vpop.f32.mrb[50].mxu1 }
0x1d13   :  { %v4927_v60 = vpop.f32.mrb[51].mxu1  ;;  %4935 = vmatprep.mubr.msk.f32.mxu0 %vm207_vm6, %v3774_v38  ;;  %v4500_v38 = vld [vmem:[%s6009_s10 + $0xb0] sm:$0xff] }
0x1d14   :  { %v4501_v60 = vld [vmem:[%s6009_s10 + $0xb8] sm:$0xff] }
0x1d1a   :  { %v3850_v61 = vpop.f32.mrb[22].mxu0 }
0x1d1b   :  { %v4932_v62 = vpop.f32.mrb[23].mxu0  ;;  %4936 = vmatmul.mubr.msk.f32.vlgmr.msra.gmra.mrb[16].mxu0 %vm207_vm6, %v3850_v61  ;;  %v5071_v61 = vpack.c.bf16 %v4501_v60, %v4500_v38 }
0x1d1c   :  { %5062 = vmatpush3.bf16.msra.mxu0 %v5059_v24  ;;  %v4502_v62 = vld [vmem:[%s6009_s10 + $0xc0] sm:$0xff] }
0x1d1d   :  { %5064 = vmatprep.subr.bf16.mxu0 %v5063_v37 }
0x1d20   :  { %5066 = vmatpush3.bf16.msra.mxu0 %v5063_v37 }
0x1d21   :  { %5068 = vmatprep.subr.bf16.mxu0 %v5067_v59 }
0x1d24   :  { %5070 = vmatpush3.bf16.msra.mxu0 %v5067_v59 }
0x1d25   :  { %5072 = vmatprep.subr.bf16.mxu0 %v5071_v61 }
0x1d28   :  { %5074 = vmatpush3.bf16.msra.mxu0 %v5071_v61 }
0x1dee   :  { %v4937_v63 = vpop.f32.mrb[16].mxu0 }
0x1def   :  { %v3940_v17 = vadd.f32 %v4937_v63, %v5669_v57  ;;  %v3928_v18 = vpop.f32.mrb[17].mxu0  ;;  %v4503_v63 = vld [vmem:[%s6009_s10 + $0xc8] sm:$0xff] }
0x1df0   :  { %v3939_v3 = vadd.f32 %v3928_v18, %v5671_v58  ;;  %v4505_v18 = vld [vmem:[%s6009_s10 + $0xd8] sm:$0xff] }
0x1df1   :  { %v5875_v4 = vadd.f32 %v4481_v2, %v3940_v17  ;;  %v4504_v17 = vld [vmem:[%s6009_s10 + $0xd0] sm:$0xff] }
0x1df2   :  { %v5877_v5 = vadd.f32 %v4481_v2, %v3939_v3  ;;  %v5075_v2 = vpack.c.bf16 %v4503_v63, %v4502_v62  ;;  %v5079_v3 = vpack.c.bf16 %v4505_v18, %v4504_v17 }
0x1df3   :  { %v3958_v47 = vsel %vm61_vm0, %v5875_v4, 0.0 }
0x1df4   :  { %3959 = vadd.xlane.f32.xlu0 %v3958_v47  ;;  %v3955_v6 = vsel %vm61_vm0, %v5877_v5, 0.0  ;;  %v4506_v47 = vld [vmem:[%s6009_s10 + $0xe0] sm:$0xff]  ;;  %5076 = vmatprep.subr.bf16.mxu0 %v5075_v2 }
0x1df5   :  { %3956 = vadd.xlane.f32.xlu1 %v3955_v6  ;;  %v4507_v6 = vld [vmem:[%s6009_s10 + $0xe8] sm:$0xff]  ;;  %5078 = vmatpush3.bf16.msra.mxu0 %v5075_v2 }
0x1df6   :  { %5080 = vmatprep.subr.bf16.mxu0 %v5079_v3 }
0x1df9   :  { %5082 = vmatpush3.bf16.msra.mxu0 %v5079_v3 }
0x1e81   :  { %v3960_v7 = vpop.xlane.xlu0 %3959 }
0x1e82   :  { %v3962_v8 = vmul.f32 0.03125, %v3960_v7  ;;  %v3957_v48 = vpop.xlane.xlu1 %3956  ;;  %v5083_v7 = vpack.c.bf16 %v4507_v6, %v4506_v47 }
0x1e83   :  { %v3961_v9 = vmul.f32 0.03125, %v3957_v48  ;;  %v4509_v48 = vld [vmem:[%s6009_s10 + $0xf8] sm:$0xff] }
0x1e84   :  { %v3964_v57 = vsub.f32 %v5875_v4, %v3962_v8  ;;  %v4508_v8 = vld [vmem:[%s6009_s10 + $0xf0] sm:$0xff]  ;;  %5084 = vmatprep.subr.bf16.mxu0 %v5083_v7 }
0x1e85   :  { %v3963_v58 = vsub.f32 %v5877_v5, %v3961_v9  ;;  %v5087_v9 = vpack.c.bf16 %v4509_v48, %v4508_v8  ;;  %5086 = vmatpush3.bf16.msra.mxu0 %v5083_v7 }
0x1e86   :  { %v3966_v10 = vmul.f32 %v3964_v57, %v3964_v57 }
0x1e87   :  { %v3965_v12 = vmul.f32 %v3963_v58, %v3963_v58  ;;  %5088 = vmatprep.subr.bf16.mxu0 %v5087_v9 }
0x1e88   :  { %v3970_v14 = vsel %vm61_vm0, %v3966_v10, 0.0 }
0x1e89   :  { %3971 = vadd.xlane.f32.xlu1 %v3970_v14  ;;  %v3967_v15 = vsel %vm61_vm0, %v3965_v12, 0.0  ;;  %5090 = vmatpush3.bf16.msra.mxu0 %v5087_v9 }
0x1e8a   :  { %3968 = vadd.xlane.f32.xlu0 %v3967_v15 }
0x1f16   :  { %v3972_v1 = vpop.xlane.xlu1 %3971 }
0x1f17   :  { %v3974_v0 = vmul.f32 0.03125, %v3972_v1  ;;  %v3969_v26 = vpop.xlane.xlu0 %3968 }
0x1f18   :  { %v3973_v27 = vmul.f32 0.03125, %v3969_v26 }
0x1f19   :  { %v3976_v29 = vadd.f32 1e-05, %v3974_v0 }
0x1f1a   :  { %v3975_v30 = vadd.f32 1e-05, %v3973_v27 }
0x1f1b   :  { %5220 = vrsqrt.f32 %v3976_v29  ;;  %vm3986_vm1 = vcmp.eq.f32.partialorder %v3976_v29, inf  ;;  %v3989_v28 = vand.u32 2147483648, %v3976_v29  ;;  %vm3988_vm2 = vcmp.eq.f32.partialorder %v3976_v29, 0.0 }
0x1f1c   :  { %5222 = vrsqrt.f32 %v3975_v30  ;;  %vm3979_vm3 = vcmp.eq.f32.partialorder %v3975_v30, inf  ;;  %v3982_v35 = vand.u32 2147483648, %v3975_v30  ;;  %vm3981_vm4 = vcmp.eq.f32.partialorder %v3975_v30, 0.0 }
0x1f25   :  { %v5221_v31 = vpop.eup %5220 }
0x1f26   :  { %v5223_v25 = vpop.eup %5222  ;;  %v3985_v32 = vmul.f32 %v5221_v31, %v3976_v29 }
0x1f27   :  { %v3978_v33 = vmul.f32 %v5223_v25, %v3975_v30 }
0x1f28   :  { %v3987_v34 = vsel %vm3986_vm1, %v3976_v29, %v3985_v32 }
0x1f29   :  { %v3990_v36 = vsel %vm3988_vm2, %v3989_v28, %v3987_v34  ;;  %v3980_v39 = vsel %vm3979_vm3, %v3975_v30, %v3978_v33  ;;  %v4511_v28 = vld [vmem:[%s6010_s11 + $0x1] ss:$0 sm:$0xff] }
0x1f2a   :  { %5224 = vrcp.f32 %v3990_v36  ;;  %v3983_v40 = vsel %vm3981_vm4, %v3982_v35, %v3980_v39 }
0x1f2b   :  { %5226 = vrcp.f32 %v3983_v40 }
0x1f34   :  { %v5225_v41 = vpop.eup %5224 }
0x1f35   :  { %v5227_v46 = vpop.eup %5226  ;;  %v3994_v43 = vmul.f32 %v5225_v41, %v3964_v57  ;;  %v4491_v57 = vld [vmem:[%s6008_s9 + $0x1] ss:$0 sm:$0xff] }
0x1f36   :  { %v3992_v44 = vmul.f32 %v5227_v46, %v3963_v58 }
0x1f37   :  { %v4002_v49 = vmul.f32 %v4484_v42, %v3994_v43 }
0x1f38   :  { %v4001_v50 = vmul.f32 %v4484_v42, %v3992_v44 }
0x1f39   :  { %v4010_v51 = vadd.f32 %v4485_v45, %v4002_v49 }
0x1f3a   :  { %v4009_v55 = vadd.f32 %v4485_v45, %v4001_v50 }
0x1f3c   :  { %4946 = vmatprep.mubr.msk.f32.mxu1 %vm61_vm0, %v4009_v55 }
0x1f3d   :  { %4947 = vmatmul.mubr.msk.f32.vlgmr.msra.gmra.mrb[52].mxu1 %vm61_vm0, %v4010_v51  ;;  %v4285_v51 = vld [vmem:[%s6013_s14] sm:$0xff] }
0x1f3e   :  { %v5091_v37 = vpack.c.bf16 %v4286_v52, %v4285_v51 }
0x1f40   :  { %5092 = vmatprep.subr.bf16.mxu1 %v5091_v37 }
0x1f41   :  { %5094 = vmatpush3.bf16.msra.mxu1 %v5091_v37 }
0x1f42   :  { %5096 = vmatprep.subr.bf16.mxu1 %v5095_v56 }
0x1f45   :  { %5098 = vmatpush3.bf16.msra.mxu1 %v5095_v56 }
0x2010   :  { %v4948_v58 = vpop.f32.mrb[52].mxu1 }
0x2011   :  { %v4102_v10 = vadd.f32 %v4948_v58, %v4491_v57  ;;  %v4096_v12 = vpop.f32.mrb[53].mxu1  ;;  %v4512_v58 = vld [vmem:[%s6011_s12] ss:$0 sm:$0xff]  ;;  %s5240_s12 = scalar_lea.vmem %s4378_s19, 256 }
0x2012   :  { %v4097_v14 = vadd.f32 %v4491_v57, %v4096_v12  ;;  %p5241_p0 = scmp.ne.s32.totalorder %s4378_s19, %s5240_s12  ;;  %p5246_p2 = scmp.lt.s32.totalorder %s5240_s12, %s5240_s12 }
0x2013   :  { %v4108_v15 = vmul.f32 %v4102_v10, %v4102_v10  ;;  %v4106_v30 = vmul.f32 0.5, %v4102_v10 }
0x2014   :  { %v4107_v16 = vmul.f32 %v4097_v14, %v4097_v14  ;;  %v4105_v27 = vmul.f32 0.5, %v4097_v14  ;;  %p5247_p3 = por %p5246_p2, %p5245_p1 }
0x2015   :  { %v4110_v19 = vmul.f32 %v4108_v15, %v4102_v10  ;;  %v4513_v15 = vld [vmem:[%s6012_s13] ss:$0 sm:$0xff] }
0x2016   :  { %v4109_v20 = vmul.f32 %v4107_v16, %v4097_v14  ;;  %p5248_p4 = pnand %p5247_p3, %p5241_p0 }
0x2017   :  { %v4112_v11 = vmul.f32 0.044715, %v4110_v19 }
0x2018   :  { %v4111_v21 = vmul.f32 0.044715, %v4109_v20 }
0x2019   :  { %v4114_v13 = vadd.f32 %v4112_v11, %v4102_v10 }
0x201a   :  { %v4113_v22 = vadd.f32 %v4111_v21, %v4097_v14 }
0x201b   :  { %v4116_v23 = vmul.f32 0.7978845, %v4114_v13 }
0x201c   :  { %v4115_v24 = vmul.f32 0.7978845, %v4113_v22 }
0x201d   :  { %5228 = vtanh.f32 %v4116_v23 }
0x201e   :  { %5230 = vtanh.f32 %v4115_v24 }
0x2027   :  { %v5229_v1 = vpop.eup %5228 }
0x2028   :  { %v5231_v0 = vpop.eup %5230  ;;  %v4120_v26 = vadd.f32 1.0, %v5229_v1 }
0x2029   :  { %v4119_v29 = vadd.f32 1.0, %v5231_v0 }
0x202a   :  { %v4122_v25 = vmul.f32 %v4120_v26, %v4106_v30 }
0x202b   :  { %v4121_v31 = vmul.f32 %v4119_v29, %v4105_v27 }
0x202d   :  { %4981 = vmatprep.mubr.f32.mxu0 %v4121_v31 }
0x202e   :  { %4982 = vmatmul.mubr.f32.vlgmr.msra.gmra.mrb[24].mxu0 %v4122_v25 }
0x2101   :  { %v4983_v32 = vpop.f32.mrb[24].mxu0 }
0x2102   :  { %v4216_v33 = vadd.f32 %v4983_v32, %v5875_v4  ;;  %v4206_v34 = vpop.f32.mrb[25].mxu0 }
0x2103   :  { %v4215_v35 = vadd.f32 %v4206_v34, %v5877_v5 }
0x2104   :  { %v4226_v36 = vadd.f32 %v4511_v28, %v4216_v33 }
0x2105   :  { %v4225_v39 = vadd.f32 %v4511_v28, %v4215_v35 }
0x2106   :  { %v4232_v40 = vsel %vm61_vm0, %v4226_v36, 0.0 }
0x2107   :  { %4233 = vadd.xlane.f32.xlu1 %v4232_v40  ;;  %v4229_v41 = vsel %vm61_vm0, %v4225_v39, 0.0 }
0x2108   :  { %4230 = vadd.xlane.f32.xlu0 %v4229_v41 }
0x2194   :  { %v4234_v42 = vpop.xlane.xlu1 %4233 }
0x2195   :  { %v4236_v46 = vmul.f32 0.03125, %v4234_v42  ;;  %v4231_v43 = vpop.xlane.xlu0 %4230 }
0x2196   :  { %v4235_v44 = vmul.f32 0.03125, %v4231_v43 }
0x2197   :  { %v4238_v45 = vsub.f32 %v4226_v36, %v4236_v46 }
0x2198   :  { %v4237_v49 = vsub.f32 %v4225_v39, %v4235_v44 }
0x2199   :  { %v4240_v50 = vmul.f32 %v4238_v45, %v4238_v45 }
0x219a   :  { %v4239_v55 = vmul.f32 %v4237_v49, %v4237_v49 }
0x219b   :  { %v4244_v4 = vsel %vm61_vm0, %v4240_v50, 0.0 }
0x219c   :  { %4245 = vadd.xlane.f32.xlu1 %v4244_v4  ;;  %v4241_v5 = vsel %vm61_vm0, %v4239_v55, 0.0 }
0x219d   :  { %4242 = vadd.xlane.f32.xlu0 %v4241_v5 }
0x2229   :  { %v4246_v59 = vpop.xlane.xlu1 %4245 }
0x222a   :  { %v4248_v38 = vmul.f32 0.03125, %v4246_v59  ;;  %v4243_v60 = vpop.xlane.xlu0 %4242 }
0x222b   :  { %v4247_v61 = vmul.f32 0.03125, %v4243_v60 }
0x222c   :  { %v4250_v62 = vadd.f32 1e-05, %v4248_v38 }
0x222d   :  { %v4249_v63 = vadd.f32 1e-05, %v4247_v61 }
0x222e   :  { %5232 = vrsqrt.f32 %v4250_v62  ;;  %vm4260_vm5 = vcmp.eq.f32.partialorder %v4250_v62, inf  ;;  %v4263_v3 = vand.u32 2147483648, %v4250_v62  ;;  %vm4262_vm6 = vcmp.eq.f32.partialorder %v4250_v62, 0.0 }
0x222f   :  { %5234 = vrsqrt.f32 %v4249_v63  ;;  %vm4253_vm7 = vcmp.eq.f32.partialorder %v4249_v63, inf  ;;  %v4256_v7 = vand.u32 2147483648, %v4249_v63  ;;  %vm4255_vm8 = vcmp.eq.f32.partialorder %v4249_v63, 0.0 }
0x2238   :  { %v5233_v2 = vpop.eup %5232 }
0x2239   :  { %v5235_v17 = vpop.eup %5234  ;;  %v4259_v18 = vmul.f32 %v5233_v2, %v4250_v62 }
0x223a   :  { %v4252_v47 = vmul.f32 %v5235_v17, %v4249_v63 }
0x223b   :  { %v4261_v6 = vsel %vm4260_vm5, %v4250_v62, %v4259_v18 }
0x223c   :  { %v4264_v8 = vsel %vm4262_vm6, %v4263_v3, %v4261_v6  ;;  %v4254_v48 = vsel %vm4253_vm7, %v4249_v63, %v4252_v47 }
0x223d   :  { %5236 = vrcp.f32 %v4264_v8  ;;  %v4257_v9 = vsel %vm4255_vm8, %v4256_v7, %v4254_v48 }
0x223e   :  { %5238 = vrcp.f32 %v4257_v9 }
0x2247   :  { %v5237_v57 = vpop.eup %5236 }
0x2248   :  { %v5239_v10 = vpop.eup %5238  ;;  %v4268_v12 = vmul.f32 %v5237_v57, %v4238_v45 }
0x2249   :  { %v4266_v14 = vmul.f32 %v5239_v10, %v4237_v49 }
0x224a   :  { %v4276_v16 = vmul.f32 %v4512_v58, %v4268_v12 }
0x224b   :  { %v4275_v19 = vmul.f32 %v4512_v58, %v4266_v14 }
0x224c   :  { %v4284_v11 = vadd.f32 %v4513_v15, %v4276_v16 }
0x224d   :  { %v4283_v20 = vadd.f32 %v4513_v15, %v4275_v19 }
0x224f   :  { %4992 = vmatprep.mubr.msk.f32.mxu1 %vm61_vm0, %v4283_v20 }
0x2250   :  { %4993 = vmatmul.mubr.msk.f32.vlgmr.msra.gmra.mrb[54].mxu1 %vm61_vm0, %v4284_v11 }
0x2323   :  { %v4994_v21 = vpop.f32.mrb[54].mxu1 }
0x2324   :  { %4371 = vst [vmem:[#allocation2 + $0x8] sm:$0xff] %v4994_v21  ;;  %v4361_v13 = vpop.f32.mrb[55].mxu1 }
0x2325   :  { %4370 = vst [vmem:[#allocation2] sm:$0xff] %v4361_v13 }
0x2326   :  { %5251 = shalt.err (!%p5248_p4)
}
0x2327   :  { %s5252_s21 = scalar_lea.hbm %s6014_s15, 256 }
0x2328   :  { %p5253_p5 = scmp.ne.s32.totalorder %s6014_s15, %s5252_s21  ;;  %p5256_p6 = scmp.lt.u32.totalorder %s5252_s21, %s6014_s15 }
0x232a   :  { %p5258_p7 = pnand %p5256_p6, %p5253_p5 }
0x232c   :  { %5261 = shalt.err (!%p5258_p7)
}
0x232d   :  { %s5279_s27 = smov 128   ;;  %s5280_s23 = smov 8  }
0x232e   :  { %4383 = dma.vmem_to_hbm [thread:$0]  %s4378_s19, 256, %s6014_s15, [#allocation3], %s5279_s27, %s5279_s27, %s5280_s23  }
0x232f   :  { %5262 = dma.done.wait [#allocation3], 256  }
0x2330   :  { %5263 = vsyncadd [#allocation3], 4294967040 }
0x2331   :  { %4387 = vsyncpa [#allocation3], 1 }

</bundles_post_ra>
